<compile_context>
chip_gen: v7x
topology: tpu7x:2x2x1
jax: 0.10.0
libtpu: 0.0.40
codegen_flags: <defaults>
</compile_context>

<pallas_src>
import jax
import jax.numpy as jnp
from jax.experimental import pallas as pl
from jax.experimental.pallas import tpu as pltpu
import numpy as np

INPUT_SIZE = 4
HIDDEN_SIZE = 32
STACKED_LAYERS = 2
BATCH = 8
SEQ = 8


def lstm_kernel(x_ref, w_ref, bw_ref, bfc_ref, out_ref, gx_sc):
    """Whole stacked-LSTM recurrence (wavefront-fused) + final linear layer.

    x_ref  : (T*B, H)          time-major flattened layer-0 input
                               (features zero-padded to H), row = t*B + b
    w_ref  : ((L+1)*H, L*4H)   rows [0 : L*H]         = fused block-bidiagonal
                                                         recurrent RHS
                               rows [L*H : (L+1)*H],
                                 cols [0 : 4H]         = Wih0^T (zero-padded),
                                                         remaining cols zero
    bw_ref : (2, L*4H)         row 0 = [b0 | b1 | ...] (b_ih + b_hh per layer)
                               row 1, cols [0:H] = w_fc, rest zero
    bfc_ref: (1,)   SMEM       final Linear bias
    out_ref: (B, 1)
    gx_sc  : (T*B, 4H) VMEM    scratch: hoisted layer-0 input projection (+b0)
    """
    TB, H = x_ref.shape
    G = 4 * H
    L = w_ref.shape[1] // G
    B = out_ref.shape[0]
    T = TB // B

    # ---- hoisted layer-0 input projection (+ folded bias), all T steps ----
    w0 = w_ref[L * H:(L + 1) * H, 0:G]                        # (H, 4H)
    b0 = bw_ref[0:1, 0:G]                                     # (1, 4H)
    gx_sc[...] = jnp.dot(x_ref[...], w0,
                         preferred_element_type=jnp.float32) + b0

    rhs = w_ref[0:L * H, :]                                   # (L*H, L*4H)
    b_layers = [bw_ref[0:1, l * G:(l + 1) * G] for l in range(L)]

    # h0 = c0 = 0 per layer (matches torch.zeros init in forward())
    h = [jnp.zeros((B, H), jnp.float32) for _ in range(L)]
    c = [jnp.zeros((B, H), jnp.float32) for _ in range(L)]

    # ---- fully-unrolled wavefront recurrence: T + L - 1 fused steps ----
    for s in range(T + L - 1):
        # States at the start of step s: h[l] == h_l[timestep s-1-l].
        lhs = h[0] if L == 1 else jnp.concatenate(h, axis=1)  # (B, L*H)
        res = jnp.dot(lhs, rhs,
                      preferred_element_type=jnp.float32)     # (B, L*4H)
        for l in range(L):
            t_l = s - l                    # this layer's timestep at step s
            if t_l < 0 or t_l >= T:
                continue                   # layer idle at this wavefront step
            gates = res[:, l * G:(l + 1) * G]                 # (B, 4H)
            if l == 0:
                # x-contribution (bias already folded in during the hoist)
                gates = gates + gx_sc[t_l * B:(t_l + 1) * B, :]
            else:
                # input contribution h_{l-1}[t_l] already inside `res`
                gates = gates + b_layers[l]
            # Activate the whole (B, 4H) gate vreg once each, then slice.
            sig = jax.nn.sigmoid(gates)
            tnh = jnp.tanh(gates)
            # PyTorch gate order: i, f, g, o
            i_g = sig[:, 0 * H:1 * H]
            f_g = sig[:, 1 * H:2 * H]
            g_g = tnh[:, 2 * H:3 * H]
            o_g = sig[:, 3 * H:4 * H]
            c[l] = f_g * c[l] + i_g * g_g
            h[l] = o_g * jnp.tanh(c[l])

    # h[L-1] == out[:, -1, :] of the top layer.
    # Final FC (out_features=1): VPU multiply + lane reduction.
    wfc = bw_ref[1:2, 0:H]                                    # (1, H)
    out_ref[...] = (jnp.sum(h[L - 1] * wfc, axis=-1, keepdims=True)
                    + bfc_ref[0])


def init_params(key, input_size, hidden_size, num_layers):
    """Deterministic init matching PyTorch LSTM/Linear shapes (U(-k, k))."""
    H = hidden_size
    params = {}
    k_lstm = 1.0 / np.sqrt(H)
    keys = jax.random.split(key, num_layers * 4 + 2)
    wih, whh, bih, bhh = [], [], [], []
    for l in range(num_layers):
        d_in = input_size if l == 0 else H
        wih.append(jax.random.uniform(keys[4 * l + 0], (4 * H, d_in),
                                      jnp.float32, -k_lstm, k_lstm))
        whh.append(jax.random.uniform(keys[4 * l + 1], (4 * H, H),
                                      jnp.float32, -k_lstm, k_lstm))
        bih.append(jax.random.uniform(keys[4 * l + 2], (4 * H,),
                                      jnp.float32, -k_lstm, k_lstm))
        bhh.append(jax.random.uniform(keys[4 * l + 3], (4 * H,),
                                      jnp.float32, -k_lstm, k_lstm))
    k_fc = 1.0 / np.sqrt(H)
    params['w_ih'] = wih
    params['w_hh'] = whh
    params['b_ih'] = bih
    params['b_hh'] = bhh
    params['w_fc'] = jax.random.uniform(keys[-2], (1, H), jnp.float32, -k_fc, k_fc)
    params['b_fc'] = jax.random.uniform(keys[-1], (1,), jnp.float32, -k_fc, k_fc)
    return params


def lstm_structure_forward(x, params, hidden_size, num_layers):
    """x: (B, T, input_size) -> (B, 1), matching LstmStructure.forward.

    Note: multiple independent (B, T, D) instances could be amortized over a
    leading "parallel" grid axis (and v7x's second TensorCore); this module's
    forward is a single instance, so the call stays ungridded.
    """
    B, T, D = x.shape
    H = hidden_size
    L = num_layers
    G = 4 * H
    assert H >= D, "kernel packs layer-0 input into the H-wide feature slot"

    # ---- glue: pack inputs / weights into kernel-friendly padded slabs ----
    # time-major, feature-padded, flattened: (T*B, H), row index = t*B + b
    x_tm = jnp.transpose(x, (1, 0, 2)).astype(jnp.float32)
    x_tm = jnp.pad(x_tm, ((0, 0), (0, 0), (0, H - D))).reshape(T * B, H)

    # fused block-bidiagonal recurrent RHS:
    #   block[m, l] = Whh_l^T if m == l ;  Wih_l^T if m == l-1 (l >= 1) ; else 0
    zeros_blk = jnp.zeros((H, G), jnp.float32)
    rows = []
    for m in range(L):
        row = []
        for l in range(L):
            if l == m:
                row.append(jnp.transpose(params['w_hh'][l]).astype(jnp.float32))
            elif l == m + 1:
                row.append(jnp.transpose(params['w_ih'][l]).astype(jnp.float32))
            else:
                row.append(zeros_blk)
        rows.append(jnp.concatenate(row, axis=1))
    rhs_fused = jnp.concatenate(rows, axis=0)                  # (L*H, L*4H)

    # layer-0 input->gates weight: transposed, zero-row-padded to H (exact),
    # appended as one extra block row of the same slab (extra cols zero).
    w0 = jnp.transpose(params['w_ih'][0]).astype(jnp.float32)  # (D, 4H)
    w0 = jnp.pad(w0, ((0, H - D), (0, 0)))                     # (H, 4H)
    w0_row = jnp.pad(w0, ((0, 0), (0, (L - 1) * G)))           # (H, L*4H)
    w_slab = jnp.concatenate([rhs_fused, w0_row], axis=0)      # ((L+1)*H, L*4H)

    # per-layer biases (b_ih + b_hh) and FC weight packed into one small slab
    b_all = jnp.concatenate(
        [(params['b_ih'][l] + params['b_hh'][l]) for l in range(L)]
    ).reshape(1, L * G)
    wfc_row = jnp.pad(params['w_fc'].reshape(1, H), ((0, 0), (0, L * G - H)))
    bw_slab = jnp.concatenate([b_all, wfc_row], axis=0).astype(jnp.float32)

    bfc = params['b_fc'].reshape(1).astype(jnp.float32)        # (1,) scalar

    vmem = pl.BlockSpec(memory_space=pltpu.MemorySpace.VMEM)
    smem = pl.BlockSpec(memory_space=pltpu.MemorySpace.SMEM)

    out = pl.pallas_call(
        lstm_kernel,
        out_shape=jax.ShapeDtypeStruct((B, 1), jnp.float32),
        in_specs=[vmem, vmem, vmem, smem],
        out_specs=vmem,
        scratch_shapes=[
            pltpu.VMEM((T * B, G), jnp.float32),   # hoisted layer-0 projection
        ],
    )(x_tm, w_slab, bw_slab, bfc)
    return out


def reference_forward(x, params, hidden_size, num_layers):
    """Pure-JAX reference of the PyTorch forward pass (for verification)."""
    B, T, _ = x.shape
    H = hidden_size
    seq = x.astype(jnp.float32)
    for l in range(num_layers):
        wih = params['w_ih'][l]
        whh = params['w_hh'][l]
        b = params['b_ih'][l] + params['b_hh'][l]
        h = jnp.zeros((B, H), jnp.float32)
        c = jnp.zeros((B, H), jnp.float32)
        outs = []
        for t in range(T):
            gates = seq[:, t, :] @ wih.T + h @ whh.T + b
            i = jax.nn.sigmoid(gates[:, 0 * H:1 * H])
            f = jax.nn.sigmoid(gates[:, 1 * H:2 * H])
            g = jnp.tanh(gates[:, 2 * H:3 * H])
            o = jax.nn.sigmoid(gates[:, 3 * H:4 * H])
            c = f * c + i * g
            h = o * jnp.tanh(c)
            outs.append(h)
        seq = jnp.stack(outs, axis=1)
    return seq[:, -1, :] @ params['w_fc'].T + params['b_fc']


if __name__ == "__main__":
    key = jax.random.PRNGKey(0)
    k_x, k_p = jax.random.split(key)

    x = jax.random.normal(k_x, (BATCH, SEQ, INPUT_SIZE), jnp.float32)
    params = init_params(k_p, INPUT_SIZE, HIDDEN_SIZE, STACKED_LAYERS)

    out = lstm_structure_forward(x, params, HIDDEN_SIZE, STACKED_LAYERS)
    out = jax.block_until_ready(out)

    ref = reference_forward(x, params, HIDDEN_SIZE, STACKED_LAYERS)
    np.testing.assert_allclose(np.asarray(out), np.asarray(ref),
                               rtol=1e-5, atol=1e-5)
    print("KERNEL_OK")
</pallas_src>

<mosaic_0001>
module attributes {stable_mosaic.version = 11 : i64} {
  func.func @lstm_kernel(%arg0: memref<64x32xf32, #tpu.memory_space<vmem>>, %arg1: memref<96x256xf32, #tpu.memory_space<vmem>>, %arg2: memref<2x256xf32, #tpu.memory_space<vmem>>, %arg3: memref<1xf32, #tpu.memory_space<smem>>, %arg4: memref<8x1xf32, #tpu.memory_space<vmem>>, %arg5: memref<64x128xf32, #tpu.memory_space<vmem>>) attributes {dimension_semantics = [], scalar_prefetch = 0 : i64, scratch_operands = 1 : i64, tpu.core_type = #tpu.core_type<tc>} {
    %c64 = arith.constant 64 : index
    %c0 = arith.constant 0 : index
    %0 = vector.load %arg1[%c64, %c0] : memref<96x256xf32, #tpu.memory_space<vmem>>, vector<32x128xf32>
    %c0_0 = arith.constant 0 : index
    %c0_1 = arith.constant 0 : index
    %1 = vector.load %arg2[%c0_0, %c0_1] : memref<2x256xf32, #tpu.memory_space<vmem>>, vector<1x128xf32>
    %c0_2 = arith.constant 0 : index
    %c0_3 = arith.constant 0 : index
    %2 = vector.load %arg0[%c0_2, %c0_3] : memref<64x32xf32, #tpu.memory_space<vmem>>, vector<64x32xf32>
    %cst = arith.constant dense<0.000000e+00> : vector<64x128xf32>
    %3 = tpu.matmul %2, %0, %cst {dimension_numbers = #tpu.dot_dimension_numbers<[1], [0], [0], [1], [0, 0, 1, 1], [], []>} : vector<64x32xf32>, vector<32x128xf32>, vector<64x128xf32> -> vector<64x128xf32>
    %4 = vector.broadcast %1 : vector<1x128xf32> to vector<64x128xf32>
    %5 = arith.addf %3, %4 : vector<64x128xf32>
    %c0_4 = arith.constant 0 : index
    %c0_5 = arith.constant 0 : index
    %6 = vector.load %arg5[%c0_4, %c0_5] : memref<64x128xf32, #tpu.memory_space<vmem>>, vector<64x128xf32>
    tpu.vector_store %arg5[%c0_4, %c0_5], %5 {strides = array<i32>} : memref<64x128xf32, #tpu.memory_space<vmem>>, vector<64x128xf32>,
    %c0_6 = arith.constant 0 : index
    %c0_7 = arith.constant 0 : index
    %7 = vector.load %arg1[%c0_6, %c0_7] : memref<96x256xf32, #tpu.memory_space<vmem>>, vector<64x256xf32>
    %c0_8 = arith.constant 0 : index
    %c128 = arith.constant 128 : index
    %8 = vector.load %arg2[%c0_8, %c128] : memref<2x256xf32, #tpu.memory_space<vmem>>, vector<1x128xf32>
    %cst_9 = arith.constant 0.000000e+00 : f32
    %9 = vector.broadcast %cst_9 : f32 to vector<8x32xf32>
    %cst_10 = arith.constant 0.000000e+00 : f32
    %10 = vector.broadcast %cst_10 : f32 to vector<8x32xf32>
    %cst_11 = arith.constant 0.000000e+00 : f32
    %11 = vector.broadcast %cst_11 : f32 to vector<8x32xf32>
    %cst_12 = arith.constant 0.000000e+00 : f32
    %12 = vector.broadcast %cst_12 : f32 to vector<8x32xf32>
    %13 = tpu.concatenate %9, %10 in 1 : vector<8x32xf32>, vector<8x32xf32> -> vector<8x64xf32>
    %cst_13 = arith.constant dense<0.000000e+00> : vector<8x256xf32>
    %14 = tpu.matmul %13, %7, %cst_13 {dimension_numbers = #tpu.dot_dimension_numbers<[1], [0], [0], [1], [0, 0, 1, 1], [], []>} : vector<8x64xf32>, vector<64x256xf32>, vector<8x256xf32> -> vector<8x256xf32>
    %15 = vector.extract_strided_slice %14 {offsets = [0, 0], sizes = [8, 128], strides = [1, 1]} : vector<8x256xf32> to vector<8x128xf32>
    %c0_14 = arith.constant 0 : index
    %c0_15 = arith.constant 0 : index
    %16 = vector.load %arg5[%c0_14, %c0_15] : memref<64x128xf32, #tpu.memory_space<vmem>>, vector<8x128xf32>
    %17 = arith.addf %15, %16 : vector<8x128xf32>
    %18 = arith.negf %17 : vector<8x128xf32>
    %19 = math.exp %18 : vector<8x128xf32>
    %cst_16 = arith.constant 1.000000e+00 : f32
    %20 = vector.broadcast %cst_16 : f32 to vector<8x128xf32>
    %21 = arith.addf %20, %19 : vector<8x128xf32>
    %22 = arith.divf %20, %21 : vector<8x128xf32>
    %23 = math.tanh %17 : vector<8x128xf32>
    %24 = vector.extract_strided_slice %22 {offsets = [0, 0], sizes = [8, 32], strides = [1, 1]} : vector<8x128xf32> to vector<8x32xf32>
    %25 = vector.extract_strided_slice %22 {offsets = [0, 32], sizes = [8, 32], strides = [1, 1]} : vector<8x128xf32> to vector<8x32xf32>
    %26 = vector.extract_strided_slice %23 {offsets = [0, 64], sizes = [8, 32], strides = [1, 1]} : vector<8x128xf32> to vector<8x32xf32>
    %27 = vector.extract_strided_slice %22 {offsets = [0, 96], sizes = [8, 32], strides = [1, 1]} : vector<8x128xf32> to vector<8x32xf32>
    %28 = arith.mulf %25, %11 : vector<8x32xf32>
    %29 = arith.mulf %24, %26 : vector<8x32xf32>
    %30 = arith.addf %28, %29 : vector<8x32xf32>
    %31 = math.tanh %30 : vector<8x32xf32>
    %32 = arith.mulf %27, %31 : vector<8x32xf32>
    %33 = tpu.concatenate %32, %10 in 1 : vector<8x32xf32>, vector<8x32xf32> -> vector<8x64xf32>
    %cst_17 = arith.constant dense<0.000000e+00> : vector<8x256xf32>
    %34 = tpu.matmul %33, %7, %cst_17 {dimension_numbers = #tpu.dot_dimension_numbers<[1], [0], [0], [1], [0, 0, 1, 1], [], []>} : vector<8x64xf32>, vector<64x256xf32>, vector<8x256xf32> -> vector<8x256xf32>
    %35 = vector.extract_strided_slice %34 {offsets = [0, 0], sizes = [8, 128], strides = [1, 1]} : vector<8x256xf32> to vector<8x128xf32>
    %c8 = arith.constant 8 : index
    %c0_18 = arith.constant 0 : index
    %36 = vector.load %arg5[%c8, %c0_18] : memref<64x128xf32, #tpu.memory_space<vmem>>, vector<8x128xf32>
    %37 = arith.addf %35, %36 : vector<8x128xf32>
    %38 = arith.negf %37 : vector<8x128xf32>
    %39 = math.exp %38 : vector<8x128xf32>
    %cst_19 = arith.constant 1.000000e+00 : f32
    %40 = vector.broadcast %cst_19 : f32 to vector<8x128xf32>
    %41 = arith.addf %40, %39 : vector<8x128xf32>
    %42 = arith.divf %40, %41 : vector<8x128xf32>
    %43 = math.tanh %37 : vector<8x128xf32>
    %44 = vector.extract_strided_slice %42 {offsets = [0, 0], sizes = [8, 32], strides = [1, 1]} : vector<8x128xf32> to vector<8x32xf32>
    %45 = vector.extract_strided_slice %42 {offsets = [0, 32], sizes = [8, 32], strides = [1, 1]} : vector<8x128xf32> to vector<8x32xf32>
    %46 = vector.extract_strided_slice %43 {offsets = [0, 64], sizes = [8, 32], strides = [1, 1]} : vector<8x128xf32> to vector<8x32xf32>
    %47 = vector.extract_strided_slice %42 {offsets = [0, 96], sizes = [8, 32], strides = [1, 1]} : vector<8x128xf32> to vector<8x32xf32>
    %48 = arith.mulf %45, %30 : vector<8x32xf32>
    %49 = arith.mulf %44, %46 : vector<8x32xf32>
    %50 = arith.addf %48, %49 : vector<8x32xf32>
    %51 = math.tanh %50 : vector<8x32xf32>
    %52 = arith.mulf %47, %51 : vector<8x32xf32>
    %53 = vector.extract_strided_slice %34 {offsets = [0, 128], sizes = [8, 128], strides = [1, 1]} : vector<8x256xf32> to vector<8x128xf32>
    %54 = vector.broadcast %8 : vector<1x128xf32> to vector<8x128xf32>
    %55 = arith.addf %53, %54 : vector<8x128xf32>
    %56 = arith.negf %55 : vector<8x128xf32>
    %57 = math.exp %56 : vector<8x128xf32>
    %cst_20 = arith.constant 1.000000e+00 : f32
    %58 = vector.broadcast %cst_20 : f32 to vector<8x128xf32>
    %59 = arith.addf %58, %57 : vector<8x128xf32>
    %60 = arith.divf %58, %59 : vector<8x128xf32>
    %61 = math.tanh %55 : vector<8x128xf32>
    %62 = vector.extract_strided_slice %60 {offsets = [0, 0], sizes = [8, 32], strides = [1, 1]} : vector<8x128xf32> to vector<8x32xf32>
    %63 = vector.extract_strided_slice %60 {offsets = [0, 32], sizes = [8, 32], strides = [1, 1]} : vector<8x128xf32> to vector<8x32xf32>
    %64 = vector.extract_strided_slice %61 {offsets = [0, 64], sizes = [8, 32], strides = [1, 1]} : vector<8x128xf32> to vector<8x32xf32>
    %65 = vector.extract_strided_slice %60 {offsets = [0, 96], sizes = [8, 32], strides = [1, 1]} : vector<8x128xf32> to vector<8x32xf32>
    %66 = arith.mulf %63, %12 : vector<8x32xf32>
    %67 = arith.mulf %62, %64 : vector<8x32xf32>
    %68 = arith.addf %66, %67 : vector<8x32xf32>
    %69 = math.tanh %68 : vector<8x32xf32>
    %70 = arith.mulf %65, %69 : vector<8x32xf32>
    %71 = tpu.concatenate %52, %70 in 1 : vector<8x32xf32>, vector<8x32xf32> -> vector<8x64xf32>
    %cst_21 = arith.constant dense<0.000000e+00> : vector<8x256xf32>
    %72 = tpu.matmul %71, %7, %cst_21 {dimension_numbers = #tpu.dot_dimension_numbers<[1], [0], [0], [1], [0, 0, 1, 1], [], []>} : vector<8x64xf32>, vector<64x256xf32>, vector<8x256xf32> -> vector<8x256xf32>
    %73 = vector.extract_strided_slice %72 {offsets = [0, 0], sizes = [8, 128], strides = [1, 1]} : vector<8x256xf32> to vector<8x128xf32>
    %c16 = arith.constant 16 : index
    %c0_22 = arith.constant 0 : index
    %74 = vector.load %arg5[%c16, %c0_22] : memref<64x128xf32, #tpu.memory_space<vmem>>, vector<8x128xf32>
    %75 = arith.addf %73, %74 : vector<8x128xf32>
    %76 = arith.negf %75 : vector<8x128xf32>
    %77 = math.exp %76 : vector<8x128xf32>
    %cst_23 = arith.constant 1.000000e+00 : f32
    %78 = vector.broadcast %cst_23 : f32 to vector<8x128xf32>
    %79 = arith.addf %78, %77 : vector<8x128xf32>
    %80 = arith.divf %78, %79 : vector<8x128xf32>
    %81 = math.tanh %75 : vector<8x128xf32>
    %82 = vector.extract_strided_slice %80 {offsets = [0, 0], sizes = [8, 32], strides = [1, 1]} : vector<8x128xf32> to vector<8x32xf32>
    %83 = vector.extract_strided_slice %80 {offsets = [0, 32], sizes = [8, 32], strides = [1, 1]} : vector<8x128xf32> to vector<8x32xf32>
    %84 = vector.extract_strided_slice %81 {offsets = [0, 64], sizes = [8, 32], strides = [1, 1]} : vector<8x128xf32> to vector<8x32xf32>
    %85 = vector.extract_strided_slice %80 {offsets = [0, 96], sizes = [8, 32], strides = [1, 1]} : vector<8x128xf32> to vector<8x32xf32>
    %86 = arith.mulf %83, %50 : vector<8x32xf32>
    %87 = arith.mulf %82, %84 : vector<8x32xf32>
    %88 = arith.addf %86, %87 : vector<8x32xf32>
    %89 = math.tanh %88 : vector<8x32xf32>
    %90 = arith.mulf %85, %89 : vector<8x32xf32>
    %91 = vector.extract_strided_slice %72 {offsets = [0, 128], sizes = [8, 128], strides = [1, 1]} : vector<8x256xf32> to vector<8x128xf32>
    %92 = vector.broadcast %8 : vector<1x128xf32> to vector<8x128xf32>
    %93 = arith.addf %91, %92 : vector<8x128xf32>
    %94 = arith.negf %93 : vector<8x128xf32>
    %95 = math.exp %94 : vector<8x128xf32>
    %cst_24 = arith.constant 1.000000e+00 : f32
    %96 = vector.broadcast %cst_24 : f32 to vector<8x128xf32>
    %97 = arith.addf %96, %95 : vector<8x128xf32>
    %98 = arith.divf %96, %97 : vector<8x128xf32>
    %99 = math.tanh %93 : vector<8x128xf32>
    %100 = vector.extract_strided_slice %98 {offsets = [0, 0], sizes = [8, 32], strides = [1, 1]} : vector<8x128xf32> to vector<8x32xf32>
    %101 = vector.extract_strided_slice %98 {offsets = [0, 32], sizes = [8, 32], strides = [1, 1]} : vector<8x128xf32> to vector<8x32xf32>
    %102 = vector.extract_strided_slice %99 {offsets = [0, 64], sizes = [8, 32], strides = [1, 1]} : vector<8x128xf32> to vector<8x32xf32>
    %103 = vector.extract_strided_slice %98 {offsets = [0, 96], sizes = [8, 32], strides = [1, 1]} : vector<8x128xf32> to vector<8x32xf32>
    %104 = arith.mulf %101, %68 : vector<8x32xf32>
    %105 = arith.mulf %100, %102 : vector<8x32xf32>
    %106 = arith.addf %104, %105 : vector<8x32xf32>
    %107 = math.tanh %106 : vector<8x32xf32>
    %108 = arith.mulf %103, %107 : vector<8x32xf32>
    %109 = tpu.concatenate %90, %108 in 1 : vector<8x32xf32>, vector<8x32xf32> -> vector<8x64xf32>
    %cst_25 = arith.constant dense<0.000000e+00> : vector<8x256xf32>
    %110 = tpu.matmul %109, %7, %cst_25 {dimension_numbers = #tpu.dot_dimension_numbers<[1], [0], [0], [1], [0, 0, 1, 1], [], []>} : vector<8x64xf32>, vector<64x256xf32>, vector<8x256xf32> -> vector<8x256xf32>
    %111 = vector.extract_strided_slice %110 {offsets = [0, 0], sizes = [8, 128], strides = [1, 1]} : vector<8x256xf32> to vector<8x128xf32>
    %c24 = arith.constant 24 : index
    %c0_26 = arith.constant 0 : index
    %112 = vector.load %arg5[%c24, %c0_26] : memref<64x128xf32, #tpu.memory_space<vmem>>, vector<8x128xf32>
    %113 = arith.addf %111, %112 : vector<8x128xf32>
    %114 = arith.negf %113 : vector<8x128xf32>
    %115 = math.exp %114 : vector<8x128xf32>
    %cst_27 = arith.constant 1.000000e+00 : f32
    %116 = vector.broadcast %cst_27 : f32 to vector<8x128xf32>
    %117 = arith.addf %116, %115 : vector<8x128xf32>
    %118 = arith.divf %116, %117 : vector<8x128xf32>
    %119 = math.tanh %113 : vector<8x128xf32>
    %120 = vector.extract_strided_slice %118 {offsets = [0, 0], sizes = [8, 32], strides = [1, 1]} : vector<8x128xf32> to vector<8x32xf32>
    %121 = vector.extract_strided_slice %118 {offsets = [0, 32], sizes = [8, 32], strides = [1, 1]} : vector<8x128xf32> to vector<8x32xf32>
    %122 = vector.extract_strided_slice %119 {offsets = [0, 64], sizes = [8, 32], strides = [1, 1]} : vector<8x128xf32> to vector<8x32xf32>
    %123 = vector.extract_strided_slice %118 {offsets = [0, 96], sizes = [8, 32], strides = [1, 1]} : vector<8x128xf32> to vector<8x32xf32>
    %124 = arith.mulf %121, %88 : vector<8x32xf32>
    %125 = arith.mulf %120, %122 : vector<8x32xf32>
    %126 = arith.addf %124, %125 : vector<8x32xf32>
    %127 = math.tanh %126 : vector<8x32xf32>
    %128 = arith.mulf %123, %127 : vector<8x32xf32>
    %129 = vector.extract_strided_slice %110 {offsets = [0, 128], sizes = [8, 128], strides = [1, 1]} : vector<8x256xf32> to vector<8x128xf32>
    %130 = vector.broadcast %8 : vector<1x128xf32> to vector<8x128xf32>
    %131 = arith.addf %129, %130 : vector<8x128xf32>
    %132 = arith.negf %131 : vector<8x128xf32>
    %133 = math.exp %132 : vector<8x128xf32>
    %cst_28 = arith.constant 1.000000e+00 : f32
    %134 = vector.broadcast %cst_28 : f32 to vector<8x128xf32>
    %135 = arith.addf %134, %133 : vector<8x128xf32>
    %136 = arith.divf %134, %135 : vector<8x128xf32>
    %137 = math.tanh %131 : vector<8x128xf32>
    %138 = vector.extract_strided_slice %136 {offsets = [0, 0], sizes = [8, 32], strides = [1, 1]} : vector<8x128xf32> to vector<8x32xf32>
    %139 = vector.extract_strided_slice %136 {offsets = [0, 32], sizes = [8, 32], strides = [1, 1]} : vector<8x128xf32> to vector<8x32xf32>
    %140 = vector.extract_strided_slice %137 {offsets = [0, 64], sizes = [8, 32], strides = [1, 1]} : vector<8x128xf32> to vector<8x32xf32>
    %141 = vector.extract_strided_slice %136 {offsets = [0, 96], sizes = [8, 32], strides = [1, 1]} : vector<8x128xf32> to vector<8x32xf32>
    %142 = arith.mulf %139, %106 : vector<8x32xf32>
    %143 = arith.mulf %138, %140 : vector<8x32xf32>
    %144 = arith.addf %142, %143 : vector<8x32xf32>
    %145 = math.tanh %144 : vector<8x32xf32>
    %146 = arith.mulf %141, %145 : vector<8x32xf32>
    %147 = tpu.concatenate %128, %146 in 1 : vector<8x32xf32>, vector<8x32xf32> -> vector<8x64xf32>
    %cst_29 = arith.constant dense<0.000000e+00> : vector<8x256xf32>
    %148 = tpu.matmul %147, %7, %cst_29 {dimension_numbers = #tpu.dot_dimension_numbers<[1], [0], [0], [1], [0, 0, 1, 1], [], []>} : vector<8x64xf32>, vector<64x256xf32>, vector<8x256xf32> -> vector<8x256xf32>
    %149 = vector.extract_strided_slice %148 {offsets = [0, 0], sizes = [8, 128], strides = [1, 1]} : vector<8x256xf32> to vector<8x128xf32>
    %c32 = arith.constant 32 : index
    %c0_30 = arith.constant 0 : index
    %150 = vector.load %arg5[%c32, %c0_30] : memref<64x128xf32, #tpu.memory_space<vmem>>, vector<8x128xf32>
    %151 = arith.addf %149, %150 : vector<8x128xf32>
    %152 = arith.negf %151 : vector<8x128xf32>
    %153 = math.exp %152 : vector<8x128xf32>
    %cst_31 = arith.constant 1.000000e+00 : f32
    %154 = vector.broadcast %cst_31 : f32 to vector<8x128xf32>
    %155 = arith.addf %154, %153 : vector<8x128xf32>
    %156 = arith.divf %154, %155 : vector<8x128xf32>
    %157 = math.tanh %151 : vector<8x128xf32>
    %158 = vector.extract_strided_slice %156 {offsets = [0, 0], sizes = [8, 32], strides = [1, 1]} : vector<8x128xf32> to vector<8x32xf32>
    %159 = vector.extract_strided_slice %156 {offsets = [0, 32], sizes = [8, 32], strides = [1, 1]} : vector<8x128xf32> to vector<8x32xf32>
    %160 = vector.extract_strided_slice %157 {offsets = [0, 64], sizes = [8, 32], strides = [1, 1]} : vector<8x128xf32> to vector<8x32xf32>
    %161 = vector.extract_strided_slice %156 {offsets = [0, 96], sizes = [8, 32], strides = [1, 1]} : vector<8x128xf32> to vector<8x32xf32>
    %162 = arith.mulf %159, %126 : vector<8x32xf32>
    %163 = arith.mulf %158, %160 : vector<8x32xf32>
    %164 = arith.addf %162, %163 : vector<8x32xf32>
    %165 = math.tanh %164 : vector<8x32xf32>
    %166 = arith.mulf %161, %165 : vector<8x32xf32>
    %167 = vector.extract_strided_slice %148 {offsets = [0, 128], sizes = [8, 128], strides = [1, 1]} : vector<8x256xf32> to vector<8x128xf32>
    %168 = vector.broadcast %8 : vector<1x128xf32> to vector<8x128xf32>
    %169 = arith.addf %167, %168 : vector<8x128xf32>
    %170 = arith.negf %169 : vector<8x128xf32>
    %171 = math.exp %170 : vector<8x128xf32>
    %cst_32 = arith.constant 1.000000e+00 : f32
    %172 = vector.broadcast %cst_32 : f32 to vector<8x128xf32>
    %173 = arith.addf %172, %171 : vector<8x128xf32>
    %174 = arith.divf %172, %173 : vector<8x128xf32>
    %175 = math.tanh %169 : vector<8x128xf32>
    %176 = vector.extract_strided_slice %174 {offsets = [0, 0], sizes = [8, 32], strides = [1, 1]} : vector<8x128xf32> to vector<8x32xf32>
    %177 = vector.extract_strided_slice %174 {offsets = [0, 32], sizes = [8, 32], strides = [1, 1]} : vector<8x128xf32> to vector<8x32xf32>
    %178 = vector.extract_strided_slice %175 {offsets = [0, 64], sizes = [8, 32], strides = [1, 1]} : vector<8x128xf32> to vector<8x32xf32>
    %179 = vector.extract_strided_slice %174 {offsets = [0, 96], sizes = [8, 32], strides = [1, 1]} : vector<8x128xf32> to vector<8x32xf32>
    %180 = arith.mulf %177, %144 : vector<8x32xf32>
    %181 = arith.mulf %176, %178 : vector<8x32xf32>
    %182 = arith.addf %180, %181 : vector<8x32xf32>
    %183 = math.tanh %182 : vector<8x32xf32>
    %184 = arith.mulf %179, %183 : vector<8x32xf32>
    %185 = tpu.concatenate %166, %184 in 1 : vector<8x32xf32>, vector<8x32xf32> -> vector<8x64xf32>
    %cst_33 = arith.constant dense<0.000000e+00> : vector<8x256xf32>
    %186 = tpu.matmul %185, %7, %cst_33 {dimension_numbers = #tpu.dot_dimension_numbers<[1], [0], [0], [1], [0, 0, 1, 1], [], []>} : vector<8x64xf32>, vector<64x256xf32>, vector<8x256xf32> -> vector<8x256xf32>
    %187 = vector.extract_strided_slice %186 {offsets = [0, 0], sizes = [8, 128], strides = [1, 1]} : vector<8x256xf32> to vector<8x128xf32>
    %c40 = arith.constant 40 : index
    %c0_34 = arith.constant 0 : index
    %188 = vector.load %arg5[%c40, %c0_34] : memref<64x128xf32, #tpu.memory_space<vmem>>, vector<8x128xf32>
    %189 = arith.addf %187, %188 : vector<8x128xf32>
    %190 = arith.negf %189 : vector<8x128xf32>
    %191 = math.exp %190 : vector<8x128xf32>
    %cst_35 = arith.constant 1.000000e+00 : f32
    %192 = vector.broadcast %cst_35 : f32 to vector<8x128xf32>
    %193 = arith.addf %192, %191 : vector<8x128xf32>
    %194 = arith.divf %192, %193 : vector<8x128xf32>
    %195 = math.tanh %189 : vector<8x128xf32>
    %196 = vector.extract_strided_slice %194 {offsets = [0, 0], sizes = [8, 32], strides = [1, 1]} : vector<8x128xf32> to vector<8x32xf32>
    %197 = vector.extract_strided_slice %194 {offsets = [0, 32], sizes = [8, 32], strides = [1, 1]} : vector<8x128xf32> to vector<8x32xf32>
    %198 = vector.extract_strided_slice %195 {offsets = [0, 64], sizes = [8, 32], strides = [1, 1]} : vector<8x128xf32> to vector<8x32xf32>
    %199 = vector.extract_strided_slice %194 {offsets = [0, 96], sizes = [8, 32], strides = [1, 1]} : vector<8x128xf32> to vector<8x32xf32>
    %200 = arith.mulf %197, %164 : vector<8x32xf32>
    %201 = arith.mulf %196, %198 : vector<8x32xf32>
    %202 = arith.addf %200, %201 : vector<8x32xf32>
    %203 = math.tanh %202 : vector<8x32xf32>
    %204 = arith.mulf %199, %203 : vector<8x32xf32>
    %205 = vector.extract_strided_slice %186 {offsets = [0, 128], sizes = [8, 128], strides = [1, 1]} : vector<8x256xf32> to vector<8x128xf32>
    %206 = vector.broadcast %8 : vector<1x128xf32> to vector<8x128xf32>
    %207 = arith.addf %205, %206 : vector<8x128xf32>
    %208 = arith.negf %207 : vector<8x128xf32>
    %209 = math.exp %208 : vector<8x128xf32>
    %cst_36 = arith.constant 1.000000e+00 : f32
    %210 = vector.broadcast %cst_36 : f32 to vector<8x128xf32>
    %211 = arith.addf %210, %209 : vector<8x128xf32>
    %212 = arith.divf %210, %211 : vector<8x128xf32>
    %213 = math.tanh %207 : vector<8x128xf32>
    %214 = vector.extract_strided_slice %212 {offsets = [0, 0], sizes = [8, 32], strides = [1, 1]} : vector<8x128xf32> to vector<8x32xf32>
    %215 = vector.extract_strided_slice %212 {offsets = [0, 32], sizes = [8, 32], strides = [1, 1]} : vector<8x128xf32> to vector<8x32xf32>
    %216 = vector.extract_strided_slice %213 {offsets = [0, 64], sizes = [8, 32], strides = [1, 1]} : vector<8x128xf32> to vector<8x32xf32>
    %217 = vector.extract_strided_slice %212 {offsets = [0, 96], sizes = [8, 32], strides = [1, 1]} : vector<8x128xf32> to vector<8x32xf32>
    %218 = arith.mulf %215, %182 : vector<8x32xf32>
    %219 = arith.mulf %214, %216 : vector<8x32xf32>
    %220 = arith.addf %218, %219 : vector<8x32xf32>
    %221 = math.tanh %220 : vector<8x32xf32>
    %222 = arith.mulf %217, %221 : vector<8x32xf32>
    %223 = tpu.concatenate %204, %222 in 1 : vector<8x32xf32>, vector<8x32xf32> -> vector<8x64xf32>
    %cst_37 = arith.constant dense<0.000000e+00> : vector<8x256xf32>
    %224 = tpu.matmul %223, %7, %cst_37 {dimension_numbers = #tpu.dot_dimension_numbers<[1], [0], [0], [1], [0, 0, 1, 1], [], []>} : vector<8x64xf32>, vector<64x256xf32>, vector<8x256xf32> -> vector<8x256xf32>
    %225 = vector.extract_strided_slice %224 {offsets = [0, 0], sizes = [8, 128], strides = [1, 1]} : vector<8x256xf32> to vector<8x128xf32>
    %c48 = arith.constant 48 : index
    %c0_38 = arith.constant 0 : index
    %226 = vector.load %arg5[%c48, %c0_38] : memref<64x128xf32, #tpu.memory_space<vmem>>, vector<8x128xf32>
    %227 = arith.addf %225, %226 : vector<8x128xf32>
    %228 = arith.negf %227 : vector<8x128xf32>
    %229 = math.exp %228 : vector<8x128xf32>
    %cst_39 = arith.constant 1.000000e+00 : f32
    %230 = vector.broadcast %cst_39 : f32 to vector<8x128xf32>
    %231 = arith.addf %230, %229 : vector<8x128xf32>
    %232 = arith.divf %230, %231 : vector<8x128xf32>
    %233 = math.tanh %227 : vector<8x128xf32>
    %234 = vector.extract_strided_slice %232 {offsets = [0, 0], sizes = [8, 32], strides = [1, 1]} : vector<8x128xf32> to vector<8x32xf32>
    %235 = vector.extract_strided_slice %232 {offsets = [0, 32], sizes = [8, 32], strides = [1, 1]} : vector<8x128xf32> to vector<8x32xf32>
    %236 = vector.extract_strided_slice %233 {offsets = [0, 64], sizes = [8, 32], strides = [1, 1]} : vector<8x128xf32> to vector<8x32xf32>
    %237 = vector.extract_strided_slice %232 {offsets = [0, 96], sizes = [8, 32], strides = [1, 1]} : vector<8x128xf32> to vector<8x32xf32>
    %238 = arith.mulf %235, %202 : vector<8x32xf32>
    %239 = arith.mulf %234, %236 : vector<8x32xf32>
    %240 = arith.addf %238, %239 : vector<8x32xf32>
    %241 = math.tanh %240 : vector<8x32xf32>
    %242 = arith.mulf %237, %241 : vector<8x32xf32>
    %243 = vector.extract_strided_slice %224 {offsets = [0, 128], sizes = [8, 128], strides = [1, 1]} : vector<8x256xf32> to vector<8x128xf32>
    %244 = vector.broadcast %8 : vector<1x128xf32> to vector<8x128xf32>
    %245 = arith.addf %243, %244 : vector<8x128xf32>
    %246 = arith.negf %245 : vector<8x128xf32>
    %247 = math.exp %246 : vector<8x128xf32>
    %cst_40 = arith.constant 1.000000e+00 : f32
    %248 = vector.broadcast %cst_40 : f32 to vector<8x128xf32>
    %249 = arith.addf %248, %247 : vector<8x128xf32>
    %250 = arith.divf %248, %249 : vector<8x128xf32>
    %251 = math.tanh %245 : vector<8x128xf32>
    %252 = vector.extract_strided_slice %250 {offsets = [0, 0], sizes = [8, 32], strides = [1, 1]} : vector<8x128xf32> to vector<8x32xf32>
    %253 = vector.extract_strided_slice %250 {offsets = [0, 32], sizes = [8, 32], strides = [1, 1]} : vector<8x128xf32> to vector<8x32xf32>
    %254 = vector.extract_strided_slice %251 {offsets = [0, 64], sizes = [8, 32], strides = [1, 1]} : vector<8x128xf32> to vector<8x32xf32>
    %255 = vector.extract_strided_slice %250 {offsets = [0, 96], sizes = [8, 32], strides = [1, 1]} : vector<8x128xf32> to vector<8x32xf32>
    %256 = arith.mulf %253, %220 : vector<8x32xf32>
    %257 = arith.mulf %252, %254 : vector<8x32xf32>
    %258 = arith.addf %256, %257 : vector<8x32xf32>
    %259 = math.tanh %258 : vector<8x32xf32>
    %260 = arith.mulf %255, %259 : vector<8x32xf32>
    %261 = tpu.concatenate %242, %260 in 1 : vector<8x32xf32>, vector<8x32xf32> -> vector<8x64xf32>
    %cst_41 = arith.constant dense<0.000000e+00> : vector<8x256xf32>
    %262 = tpu.matmul %261, %7, %cst_41 {dimension_numbers = #tpu.dot_dimension_numbers<[1], [0], [0], [1], [0, 0, 1, 1], [], []>} : vector<8x64xf32>, vector<64x256xf32>, vector<8x256xf32> -> vector<8x256xf32>
    %263 = vector.extract_strided_slice %262 {offsets = [0, 0], sizes = [8, 128], strides = [1, 1]} : vector<8x256xf32> to vector<8x128xf32>
    %c56 = arith.constant 56 : index
    %c0_42 = arith.constant 0 : index
    %264 = vector.load %arg5[%c56, %c0_42] : memref<64x128xf32, #tpu.memory_space<vmem>>, vector<8x128xf32>
    %265 = arith.addf %263, %264 : vector<8x128xf32>
    %266 = arith.negf %265 : vector<8x128xf32>
    %267 = math.exp %266 : vector<8x128xf32>
    %cst_43 = arith.constant 1.000000e+00 : f32
    %268 = vector.broadcast %cst_43 : f32 to vector<8x128xf32>
    %269 = arith.addf %268, %267 : vector<8x128xf32>
    %270 = arith.divf %268, %269 : vector<8x128xf32>
    %271 = math.tanh %265 : vector<8x128xf32>
    %272 = vector.extract_strided_slice %270 {offsets = [0, 0], sizes = [8, 32], strides = [1, 1]} : vector<8x128xf32> to vector<8x32xf32>
    %273 = vector.extract_strided_slice %270 {offsets = [0, 32], sizes = [8, 32], strides = [1, 1]} : vector<8x128xf32> to vector<8x32xf32>
    %274 = vector.extract_strided_slice %271 {offsets = [0, 64], sizes = [8, 32], strides = [1, 1]} : vector<8x128xf32> to vector<8x32xf32>
    %275 = vector.extract_strided_slice %270 {offsets = [0, 96], sizes = [8, 32], strides = [1, 1]} : vector<8x128xf32> to vector<8x32xf32>
    %276 = arith.mulf %273, %240 : vector<8x32xf32>
    %277 = arith.mulf %272, %274 : vector<8x32xf32>
    %278 = arith.addf %276, %277 : vector<8x32xf32>
    %279 = math.tanh %278 : vector<8x32xf32>
    %280 = arith.mulf %275, %279 : vector<8x32xf32>
    %281 = vector.extract_strided_slice %262 {offsets = [0, 128], sizes = [8, 128], strides = [1, 1]} : vector<8x256xf32> to vector<8x128xf32>
    %282 = vector.broadcast %8 : vector<1x128xf32> to vector<8x128xf32>
    %283 = arith.addf %281, %282 : vector<8x128xf32>
    %284 = arith.negf %283 : vector<8x128xf32>
    %285 = math.exp %284 : vector<8x128xf32>
    %cst_44 = arith.constant 1.000000e+00 : f32
    %286 = vector.broadcast %cst_44 : f32 to vector<8x128xf32>
    %287 = arith.addf %286, %285 : vector<8x128xf32>
    %288 = arith.divf %286, %287 : vector<8x128xf32>
    %289 = math.tanh %283 : vector<8x128xf32>
    %290 = vector.extract_strided_slice %288 {offsets = [0, 0], sizes = [8, 32], strides = [1, 1]} : vector<8x128xf32> to vector<8x32xf32>
    %291 = vector.extract_strided_slice %288 {offsets = [0, 32], sizes = [8, 32], strides = [1, 1]} : vector<8x128xf32> to vector<8x32xf32>
    %292 = vector.extract_strided_slice %289 {offsets = [0, 64], sizes = [8, 32], strides = [1, 1]} : vector<8x128xf32> to vector<8x32xf32>
    %293 = vector.extract_strided_slice %288 {offsets = [0, 96], sizes = [8, 32], strides = [1, 1]} : vector<8x128xf32> to vector<8x32xf32>
    %294 = arith.mulf %291, %258 : vector<8x32xf32>
    %295 = arith.mulf %290, %292 : vector<8x32xf32>
    %296 = arith.addf %294, %295 : vector<8x32xf32>
    %297 = math.tanh %296 : vector<8x32xf32>
    %298 = arith.mulf %293, %297 : vector<8x32xf32>
    %299 = tpu.concatenate %280, %298 in 1 : vector<8x32xf32>, vector<8x32xf32> -> vector<8x64xf32>
    %cst_45 = arith.constant dense<0.000000e+00> : vector<8x256xf32>
    %300 = tpu.matmul %299, %7, %cst_45 {dimension_numbers = #tpu.dot_dimension_numbers<[1], [0], [0], [1], [0, 0, 1, 1], [], []>} : vector<8x64xf32>, vector<64x256xf32>, vector<8x256xf32> -> vector<8x256xf32>
    %301 = vector.extract_strided_slice %300 {offsets = [0, 128], sizes = [8, 128], strides = [1, 1]} : vector<8x256xf32> to vector<8x128xf32>
    %302 = vector.broadcast %8 : vector<1x128xf32> to vector<8x128xf32>
    %303 = arith.addf %301, %302 : vector<8x128xf32>
    %304 = arith.negf %303 : vector<8x128xf32>
    %305 = math.exp %304 : vector<8x128xf32>
    %cst_46 = arith.constant 1.000000e+00 : f32
    %306 = vector.broadcast %cst_46 : f32 to vector<8x128xf32>
    %307 = arith.addf %306, %305 : vector<8x128xf32>
    %308 = arith.divf %306, %307 : vector<8x128xf32>
    %309 = math.tanh %303 : vector<8x128xf32>
    %310 = vector.extract_strided_slice %308 {offsets = [0, 0], sizes = [8, 32], strides = [1, 1]} : vector<8x128xf32> to vector<8x32xf32>
    %311 = vector.extract_strided_slice %308 {offsets = [0, 32], sizes = [8, 32], strides = [1, 1]} : vector<8x128xf32> to vector<8x32xf32>
    %312 = vector.extract_strided_slice %309 {offsets = [0, 64], sizes = [8, 32], strides = [1, 1]} : vector<8x128xf32> to vector<8x32xf32>
    %313 = vector.extract_strided_slice %308 {offsets = [0, 96], sizes = [8, 32], strides = [1, 1]} : vector<8x128xf32> to vector<8x32xf32>
    %314 = arith.mulf %311, %296 : vector<8x32xf32>
    %315 = arith.mulf %310, %312 : vector<8x32xf32>
    %316 = arith.addf %314, %315 : vector<8x32xf32>
    %317 = math.tanh %316 : vector<8x32xf32>
    %318 = arith.mulf %313, %317 : vector<8x32xf32>
    %c1 = arith.constant 1 : index
    %c0_47 = arith.constant 0 : index
    %319 = vector.load %arg2[%c1, %c0_47] : memref<2x256xf32, #tpu.memory_space<vmem>>, vector<1x32xf32>
    %320 = vector.broadcast %319 : vector<1x32xf32> to vector<8x32xf32>
    %321 = arith.mulf %318, %320 : vector<8x32xf32>
    %cst_48 = arith.constant dense<0.000000e+00> : vector<8xf32>
    %322 = vector.multi_reduction <add>, %321, %cst_48 [1] : vector<8x32xf32> to vector<8xf32>
    %323 = vector.shape_cast %322 : vector<8xf32> to vector<8x1xf32>
    %c0_49 = arith.constant 0 : index
    %324 = memref.load %arg3[%c0_49] : memref<1xf32, #tpu.memory_space<smem>>
    %325 = vector.broadcast %324 : f32 to vector<8x1xf32>
    %326 = arith.addf %323, %325 : vector<8x1xf32>
    %c0_50 = arith.constant 0 : index
    %c0_51 = arith.constant 0 : index
    %327 = vector.load %arg4[%c0_50, %c0_51] : memref<8x1xf32, #tpu.memory_space<vmem>>, vector<8x1xf32>
    tpu.vector_store %arg4[%c0_50, %c0_51], %326 {strides = array<i32>} : memref<8x1xf32, #tpu.memory_space<vmem>>, vector<8x1xf32>,
    return
  }
}

</mosaic_0001>

<bundles_post_ra>
// kernel: tpu_custom_call.1
= control target key start
LH: loop header
LB: loop body
LE: loop exit
PB: predicated region body
PF: predicated region fallthrough
CT: control target
= control target key end

     0   :  { %10 = vsyncpa [#allocation5], 0  ;;  %s1754_s15 = smov [#allocation4]   ;;  %s2066_s0 = inlined_call_operand.vmem [shape: f32[64,32], index: 0, kind: input, shape index: {}]   ;;  %s2067_s1 = inlined_call_operand.hbm [shape: f32[96,256], index: 1, kind: input, shape index: {}]   ;;  %s2068_s2 = inlined_call_operand.vmem [shape: f32[2,256], index: 2, kind: input, shape index: {}]   ;;  %s2069_s3 = inlined_call_operand.<no memory space> [shape: f32[1], index: 3, kind: input, shape index: {}]   ;;  %s2070_s4 = inlined_call_operand.vmem [shape: f32[8,1], index: 4, kind: output, shape index: {}]  }
   0x1   :  { %s18_s16 = sshll.u32 %s1754_s15, 4  ;;  %s1730_s19 = scalar_lea.hbm %s2067_s1, 3072  ;;  %s19_s16 = int_to_ptr.vmem [resolvable:$true] %s18_s16 }
   0x2   :  { %p1731_p0 = scmp.ne.s32.totalorder %s2067_s1, %s1730_s19  ;;  %p1734_p1 = scmp.lt.u32.totalorder %s1730_s19, %s2067_s1 }
   0x4   :  { %p1736_p2 = pnand %p1734_p1, %p1731_p0 }
   0x6   :  { %1739 = shalt.err (!%p1736_p2)
}
   0x7   :  { %s1740_s24 = scalar_lea.vmem %s19_s16, 3072  ;;  %p1745_p4 = scmp.lt.s32.totalorder %s19_s16, %s19_s16 }
   0x8   :  { %p1741_p3 = scmp.ne.s32.totalorder %s19_s16, %s1740_s24  ;;  %p1746_p5 = scmp.lt.s32.totalorder %s1740_s24, %s1740_s24 }
   0xa   :  { %p1747_p6 = por %p1746_p5, %p1745_p4 }
   0xc   :  { %p1748_p7 = pnand %p1747_p6, %p1741_p3 }
   0xe   :  { %1751 = shalt.err (!%p1748_p7)
}
   0xf   :  { %s1755_s25 = smov 256   ;;  %s1756_s26 = smov 16  }
  0x10   :  { %24 = dma.hbm_to_vmem [thread:$0]  %s2067_s1, 3072, %s19_s16, [#allocation5], %s1755_s25, %s1755_s25, %s1756_s26  }
  0x11   :  { %1752 = dma.done.wait [#allocation5], 3072  }
  0x12   :  { %1753 = vsyncadd [#allocation5], 4294964224  ;;  %v1757_v0 = vmov 0.0   ;;  %v188_v1 = vld [vmem:[#allocation4 + $0x8] sm:$0xff]  ;;  %v190_v2 = vld [vmem:[#allocation4 + $0x18] sm:$0xff]  ;;  %vm49_vm0 = vcmask 261120  }
  0x13   :  { %272 = vmatprep.mubr.f32.mxu1 %v1757_v0  ;;  %v187_v3 = vld [vmem:[#allocation4] sm:$0xff]  ;;  %v1799_v4 = vpack.c.bf16 %v190_v2, %v188_v1  ;;  %v189_v5 = vld [vmem:[#allocation4 + $0x10] sm:$0xff]  ;;  %v192_v10 = vld [vmem:[#allocation4 + $0x28] sm:$0xff]  ;;  %s1758_s8 = smov 64   ;;  %s1759_s9 = smov 32   ;;  %vm204_vm1 = vcmask 523264  }
  0x14   :  { %v32_v6 = vld [vmem:[#allocation4 + $0x80] sm:$0xff]  ;;  %v33_v7 = vld [vmem:[#allocation4 + $0x90] sm:$0xff]  ;;  %v1801_v8 = vpack.c.bf16 %v189_v5, %v187_v3  ;;  %v194_v11 = vld [vmem:[#allocation4 + $0x38] sm:$0xff]  ;;  %s1760_s25 = smov 96   ;;  %vm1369_vm2 = vcmask 7168  }
  0x15   :  { %v1443_v9 = vpack.c.bf16 %v33_v7, %v32_v6  ;;  %v191_v12 = vld [vmem:[#allocation4 + $0x20] sm:$0xff]  ;;  %1452 = vmatprep.subr.bf16.mxu1 %v1799_v4  ;;  %v1804_v13 = vpack.c.bf16 %v194_v11, %v192_v10  ;;  %v193_v14 = vld [vmem:[#allocation4 + $0x30] sm:$0xff]  ;;  %v196_v19 = vld [vmem:[#allocation4 + $0x48] sm:$0xff] }
  0x16   :  { %v34_v15 = vld [vmem:[#allocation4 + $0xa0] sm:$0xff]  ;;  %v35_v16 = vld [vmem:[#allocation4 + $0xb0] sm:$0xff]  ;;  %1454 = vmatpush1.bf16.msra.mxu1 %v1801_v8  ;;  %v1807_v17 = vpack.c.bf16 %v193_v14, %v191_v12  ;;  %v198_v20 = vld [vmem:[#allocation4 + $0x58] sm:$0xff] }
  0x17   :  { %1444 = vmatprep.subr.bf16.mxu0 %v1443_v9  ;;  %v1447_v18 = vpack.c.bf16 %v35_v16, %v34_v15  ;;  %1456 = vmatprep.subr.bf16.mxu1 %v1804_v13  ;;  %v1810_v21 = vpack.c.bf16 %v198_v20, %v196_v19  ;;  %v195_v22 = vld [vmem:[#allocation4 + $0x40] sm:$0xff]  ;;  %v197_v23 = vld [vmem:[#allocation4 + $0x50] sm:$0xff]  ;;  %v200_v25 = vld [vmem:[#allocation4 + $0x68] sm:$0xff] }
  0x18   :  { %1446 = vmatpush3.bf16.msra.mxu0 %v1443_v9  ;;  %v37_v24 = vld [vmem:[%s2066_s0] sm:$0xff]  ;;  %v202_v26 = vld [vmem:[#allocation4 + $0x78] sm:$0xff]  ;;  %v1817_v27 = vpack.c.bf16 %v197_v23, %v195_v22  ;;  %v38_v28 = vld [vmem:[%s2066_s0 + $0x8] sm:$0xff] }
  0x19   :  { %1448 = vmatprep.subr.bf16.mxu0 %v1447_v18  ;;  %1431 = vmatprep.mubr.msk.f32.mxu0 %vm49_vm0, %v37_v24  ;;  %v1823_v29 = vpack.c.bf16 %v202_v26, %v200_v25  ;;  %v199_v30 = vld [vmem:[#allocation4 + $0x60] sm:$0xff]  ;;  %v201_v31 = vld [vmem:[#allocation4 + $0x70] sm:$0xff]  ;;  %v40_v51 = vld [vmem:[%s2066_s0 + $0x18] sm:$0xff] }
  0x1a   :  { %1458 = vmatpush1.bf16.msra.mxu1 %v1807_v17  ;;  %v1828_v32 = vpack.c.bf16 %v201_v31, %v199_v30  ;;  %v1854_v34 = vld [vmem:[%s2068_s2] ss:$0 sm:$0xff]  ;;  %v39_v50 = vld [vmem:[%s2066_s0 + $0x10] sm:$0xff]  ;;  %v42_v53 = vld [vmem:[%s2066_s0 + $0x28] sm:$0xff] }
  0x1b   :  { %1460 = vmatprep.subr.bf16.mxu1 %v1810_v21  ;;  %v41_v52 = vld [vmem:[%s2066_s0 + $0x20] sm:$0xff]  ;;  %v43_v54 = vld [vmem:[%s2066_s0 + $0x30] sm:$0xff]  ;;  %v44_v55 = vld [vmem:[%s2066_s0 + $0x38] sm:$0xff] }
  0x1c   :  { %1450 = vmatpush3.bf16.msra.mxu0 %v1447_v18  ;;  %v1916_v6 = vld [vmem:[%s2068_s2 + $0x2] ss:$0 sm:$0xff] }
  0x1d   :  { %1468 = vmatprep.subr.bf16.mxu0 %v1799_v4 }
  0x1e   :  { %1462 = vmatpush1.bf16.msra.mxu1 %v1817_v27 }
  0x1f   :  { %1432 = vmatmul.mubr.msk.f32.vlgmr.msra.gmra.mrb[0].mxu0 %vm49_vm0, %v38_v28  ;;  %1464 = vmatprep.subr.bf16.mxu1 %v1823_v29 }
  0x20   :  { %1470 = vmatpush1.bf16.msra.mxu0 %v1801_v8  ;;  %1434 = vmatprep.mubr.msk.f32.mxu0 %vm49_vm0, %v39_v50 }
  0x21   :  { %1472 = vmatprep.subr.bf16.mxu0 %v1804_v13 }
  0x22   :  { %1466 = vmatpush1.bf16.msra.mxu1 %v1828_v32 }
  0x23   :  { %1484 = vmatprep.subr.bf16.mxu1 %v1799_v4  ;;  %1435 = vmatmul.mubr.msk.f32.gmra.mrb[2].mxu0 %vm49_vm0, %v40_v51 }
  0x24   :  { %1474 = vmatpush1.bf16.msra.mxu0 %v1807_v17  ;;  %1437 = vmatprep.mubr.msk.f32.mxu0 %vm49_vm0, %v41_v52 }
  0x25   :  { %1476 = vmatprep.subr.bf16.mxu0 %v1810_v21  ;;  %273 = vmatmul.mubr.f32.vlgmr.msra.gmra.mrb[0].mxu1 %v1757_v0 }
  0x26   :  { %1486 = vmatpush1.bf16.msra.mxu1 %v1801_v8  ;;  %514 = vmatprep.mubr.f32.mxu1 %v1757_v0 }
  0x27   :  { %1488 = vmatprep.subr.bf16.mxu1 %v1804_v13  ;;  %1438 = vmatmul.mubr.msk.f32.gmra.mrb[4].mxu0 %vm49_vm0, %v42_v53 }
  0x28   :  { %1478 = vmatpush1.bf16.msra.mxu0 %v1817_v27  ;;  %1440 = vmatprep.mubr.msk.f32.mxu0 %vm49_vm0, %v43_v54 }
  0x29   :  { %1480 = vmatprep.subr.bf16.mxu0 %v1823_v29 }
  0x2a   :  { %1490 = vmatpush1.bf16.msra.mxu1 %v1807_v17 }
  0x2b   :  { %1492 = vmatprep.subr.bf16.mxu1 %v1810_v21  ;;  %1441 = vmatmul.mubr.msk.f32.gmra.mrb[6].mxu0 %vm49_vm0, %v44_v55 }
  0x2c   :  { %1482 = vmatpush1.bf16.msra.mxu0 %v1828_v32  ;;  %376 = vmatprep.mubr.f32.mxu0 %v1757_v0 }
  0x2d   :  { %1500 = vmatprep.subr.bf16.mxu0 %v1799_v4 }
  0x2e   :  { %1494 = vmatpush1.bf16.msra.mxu1 %v1817_v27 }
  0x2f   :  { %1496 = vmatprep.subr.bf16.mxu1 %v1823_v29 }
  0x32   :  { %1498 = vmatpush1.bf16.msra.mxu1 %v1828_v32 }
  0x33   :  { %1516 = vmatprep.subr.bf16.mxu1 %v1799_v4 }
  0xf2   :  { %v1433_v33 = vpop.f32.mrb[0].mxu0 }
  0xf3   :  { %v140_v35 = vpop.f32.mrb[1].mxu0  ;;  %v146_v5 = vadd.f32 %v1433_v33, %v1854_v34 }
  0xf4   :  { %v141_v36 = vadd.f32 %v1854_v34, %v140_v35 }
  0xf6   :  { %v1889_v59 = vpop.f32.mrb[2].mxu0 }
  0xf7   :  { %v1891_v60 = vpop.f32.mrb[3].mxu0 }
  0xf8   :  { %v274_v37 = vpop.f32.mrb[0].mxu1 }
  0xf9   :  { %v279_v38 = vadd.f32 %v274_v37, %v141_v36  ;;  %v276_v39 = vpop.f32.mrb[1].mxu1 }
  0xfa   :  { %v1893_v61 = vpop.f32.mrb[4].mxu0 }
  0xfb   :  { %1602 = vtanh.f32 %v279_v38  ;;  %v1385_v41 = vmul.f32 -1.442695, %v279_v38  ;;  %v1895_v62 = vpop.f32.mrb[5].mxu0 }
  0xfd   :  { %1604 = vpow2.f32 %v1385_v41 }
  0xfe   :  { %v1897_v63 = vpop.f32.mrb[6].mxu0 }
  0xff   :  { %v1899_v1 = vpop.f32.mrb[7].mxu0 }
 0x105   :  { %v1603_v40 = vpop.eup %1602 }
 0x106   :  { %289 = vrot.lane.b32.xlu0 %v1603_v40, %s1758_s8 }
 0x107   :  { %v1605_v42 = vpop.eup %1604 }
 0x108   :  { %v283_v43 = vadd.f32 1.0, %v1605_v42 }
 0x10a   :  { %1606 = vrcp.f32 %v283_v43 }
 0x114   :  { %v1607_v44 = vpop.eup %1606 }
 0x115   :  { %v287_v47 = vmul.f32 0.0, %v1607_v44 }
 0x178   :  { %v290_v45 = vpop.permute.xlu0 %289 }
 0x179   :  { %v292_v46 = vmul.f32 %v1607_v44, %v290_v45 }
 0x17b   :  { %294 = vrot.lane.b32.xlu0 %v292_v46, %s1759_s9 }
 0x1ed   :  { %v295_v48 = vpop.permute.xlu0 %294 }
 0x1ee   :  { %v1859_v49 = vadd.f32 %v295_v48, %v287_v47  ;;  %v151_v48 = vadd.f32 %v1854_v34, %v1891_v60 }
 0x1f0   :  { %1608 = vtanh.f32 %v1859_v49 }
 0x1fa   :  { %v1609_v56 = vpop.eup %1608 }
 0x1fb   :  { %300 = vrot.lane.b32.xlu1 %v1609_v56, %s1758_s8 }
 0x26d   :  { %v301_v57 = vpop.permute.xlu1 %300 }
 0x26e   :  { %v303_v58 = vmul.f32 %v1607_v44, %v301_v57 }
 0x270   :  { %305 = vrot.lane.b32.xlu1 %v303_v58, %s1759_s9 }
 0x2e2   :  { %v306_v2 = vpop.permute.xlu1 %305 }
 0x2e3   :  { %v308_v3 = vsel %vm49_vm0, %v306_v2, 0.0 }
 0x2e4   :  { %1386 = vmatmul.mubr.msk.f32.vlgmr.msra.gmra.mrb[8].mxu0 %vm204_vm1, %v308_v3 }
 0x2e5   :  { %1502 = vmatpush1.bf16.msra.mxu0 %v1801_v8  ;;  %648 = vmatprep.mubr.f32.mxu0 %v1757_v0 }
 0x2e6   :  { %1504 = vmatprep.subr.bf16.mxu0 %v1804_v13 }
 0x2e9   :  { %1506 = vmatpush1.bf16.msra.mxu0 %v1807_v17 }
 0x2ea   :  { %1508 = vmatprep.subr.bf16.mxu0 %v1810_v21 }
 0x2ed   :  { %1510 = vmatpush1.bf16.msra.mxu0 %v1817_v27 }
 0x2ee   :  { %1512 = vmatprep.subr.bf16.mxu0 %v1823_v29 }
 0x2f1   :  { %1514 = vmatpush1.bf16.msra.mxu0 %v1828_v32 }
 0x2f2   :  { %1532 = vmatprep.subr.bf16.mxu0 %v1799_v4 }
 0x3b7   :  { %v378_v7 = vpop.f32.mrb[8].mxu0 }
 0x3b8   :  { %v384_v9 = vadd.f32 %v378_v7, %v146_v5  ;;  %v380_v10 = vpop.f32.mrb[9].mxu0 }
 0x3b9   :  { %v413_v11 = vadd.f32 %v1916_v6, %v380_v10 }
 0x3ba   :  { %1610 = vtanh.f32 %v384_v9  ;;  %v1387_v15 = vmul.f32 -1.442695, %v384_v9 }
 0x3bb   :  { %1612 = vtanh.f32 %v413_v11  ;;  %v1389_v16 = vmul.f32 -1.442695, %v413_v11 }
 0x3bc   :  { %1614 = vpow2.f32 %v1387_v15 }
 0x3bd   :  { %1616 = vpow2.f32 %v1389_v16 }
 0x3c4   :  { %v1611_v12 = vpop.eup %1610 }
 0x3c5   :  { %v1613_v14 = vpop.eup %1612  ;;  %394 = vrot.lane.b32.xlu0 %v1611_v12, %s1758_s8 }
 0x3c6   :  { %423 = vrot.lane.b32.xlu1 %v1613_v14, %s1758_s8  ;;  %v1615_v18 = vpop.eup %1614 }
 0x3c7   :  { %v1617_v19 = vpop.eup %1616  ;;  %v388_v20 = vadd.f32 1.0, %v1615_v18 }
 0x3c8   :  { %v417_v22 = vadd.f32 1.0, %v1617_v19 }
 0x3c9   :  { %1618 = vrcp.f32 %v388_v20 }
 0x3ca   :  { %1620 = vrcp.f32 %v417_v22 }
 0x3d3   :  { %v1619_v23 = vpop.eup %1618 }
 0x3d4   :  { %v1621_v25 = vpop.eup %1620  ;;  %v392_v31 = vmul.f32 %v1619_v23, %v1859_v49 }
 0x3d5   :  { %v421_v35 = vmul.f32 0.0, %v1621_v25 }
 0x437   :  { %v395_v24 = vpop.permute.xlu0 %394 }
 0x438   :  { %v397_v26 = vmul.f32 %v1619_v23, %v395_v24  ;;  %v424_v28 = vpop.permute.xlu1 %423 }
 0x439   :  { %v426_v30 = vmul.f32 %v1621_v25, %v424_v28 }
 0x43a   :  { %399 = vrot.lane.b32.xlu0 %v397_v26, %s1759_s9 }
 0x43b   :  { %428 = vrot.lane.b32.xlu1 %v426_v30, %s1759_s9 }
 0x4ac   :  { %v400_v33 = vpop.permute.xlu0 %399 }
 0x4ad   :  { %v402_v36 = vadd.f32 %v400_v33, %v392_v31  ;;  %v429_v37 = vpop.permute.xlu1 %428  ;;  %v156_v33 = vadd.f32 %v1889_v59, %v1854_v34 }
 0x4ae   :  { %v431_v38 = vadd.f32 %v429_v37, %v421_v35 }
 0x4af   :  { %1622 = vtanh.f32 %v402_v36 }
 0x4b0   :  { %1624 = vtanh.f32 %v431_v38 }
 0x4b9   :  { %v1623_v39 = vpop.eup %1622 }
 0x4ba   :  { %v1625_v40 = vpop.eup %1624  ;;  %405 = vrot.lane.b32.xlu0 %v1623_v39, %s1758_s8 }
 0x4bb   :  { %434 = vrot.lane.b32.xlu1 %v1625_v40, %s1758_s8 }
 0x52c   :  { %v406_v41 = vpop.permute.xlu0 %405 }
 0x52d   :  { %v408_v42 = vmul.f32 %v1619_v23, %v406_v41  ;;  %v435_v43 = vpop.permute.xlu1 %434 }
 0x52e   :  { %v437_v44 = vmul.f32 %v1621_v25, %v435_v43 }
 0x52f   :  { %439 = vrot.lane.b32.xlu0 %v408_v42, %s1759_s9 }
 0x530   :  { %443 = vrot.lane.b32.xlu1 %v437_v44, %s1758_s8 }
 0x5a1   :  { %v440_v45 = vpop.permute.xlu0 %439 }
 0x5a2   :  { %v444_v46 = vpop.permute.xlu1 %443 }
 0x5a3   :  { %v446_v47 = vsel %vm49_vm0, %v440_v45, %v444_v46 }
 0x5a4   :  { %1390 = vmatmul.mubr.msk.f32.vlgmr.msra.gmra.mrb[2].mxu1 %vm204_vm1, %v446_v47 }
 0x5a5   :  { %1518 = vmatpush1.bf16.msra.mxu1 %v1801_v8  ;;  %782 = vmatprep.mubr.f32.mxu1 %v1757_v0 }
 0x5a6   :  { %1520 = vmatprep.subr.bf16.mxu1 %v1804_v13 }
 0x5a9   :  { %1522 = vmatpush1.bf16.msra.mxu1 %v1807_v17 }
 0x5aa   :  { %1524 = vmatprep.subr.bf16.mxu1 %v1810_v21 }
 0x5ad   :  { %1526 = vmatpush1.bf16.msra.mxu1 %v1817_v27 }
 0x5ae   :  { %1528 = vmatprep.subr.bf16.mxu1 %v1823_v29 }
 0x5b1   :  { %1530 = vmatpush1.bf16.msra.mxu1 %v1828_v32 }
 0x5b2   :  { %1548 = vmatprep.subr.bf16.mxu1 %v1799_v4 }
 0x677   :  { %v516_v49 = vpop.f32.mrb[2].mxu1 }
 0x678   :  { %v522_v50 = vadd.f32 %v516_v49, %v151_v48  ;;  %v518_v51 = vpop.f32.mrb[3].mxu1 }
 0x679   :  { %v547_v52 = vadd.f32 %v1916_v6, %v518_v51 }
 0x67a   :  { %1626 = vtanh.f32 %v522_v50  ;;  %v1391_v55 = vmul.f32 -1.442695, %v522_v50 }
 0x67b   :  { %1628 = vtanh.f32 %v547_v52  ;;  %v1392_v56 = vmul.f32 -1.442695, %v547_v52 }
 0x67c   :  { %1630 = vpow2.f32 %v1391_v55 }
 0x67d   :  { %1632 = vpow2.f32 %v1392_v56 }
 0x684   :  { %v1627_v53 = vpop.eup %1626 }
 0x685   :  { %v1629_v54 = vpop.eup %1628  ;;  %532 = vrot.lane.b32.xlu0 %v1627_v53, %s1758_s8 }
 0x686   :  { %557 = vrot.lane.b32.xlu1 %v1629_v54, %s1758_s8  ;;  %v1631_v57 = vpop.eup %1630 }
 0x687   :  { %v1633_v58 = vpop.eup %1632  ;;  %v526_v60 = vadd.f32 1.0, %v1631_v57 }
 0x688   :  { %v551_v2 = vadd.f32 1.0, %v1633_v58 }
 0x689   :  { %1634 = vrcp.f32 %v526_v60 }
 0x68a   :  { %1636 = vrcp.f32 %v551_v2 }
 0x693   :  { %v1635_v3 = vpop.eup %1634 }
 0x694   :  { %v1637_v7 = vpop.eup %1636  ;;  %v530_v12 = vmul.f32 %v1635_v3, %v402_v36 }
 0x695   :  { %v555_v15 = vmul.f32 %v1637_v7, %v431_v38 }
 0x6f7   :  { %v533_v5 = vpop.permute.xlu0 %532 }
 0x6f8   :  { %v535_v9 = vmul.f32 %v1635_v3, %v533_v5  ;;  %v558_v10 = vpop.permute.xlu1 %557 }
 0x6f9   :  { %v560_v11 = vmul.f32 %v1637_v7, %v558_v10 }
 0x6fa   :  { %537 = vrot.lane.b32.xlu0 %v535_v9, %s1759_s9 }
 0x6fb   :  { %562 = vrot.lane.b32.xlu1 %v560_v11, %s1759_s9 }
 0x76c   :  { %v538_v14 = vpop.permute.xlu0 %537 }
 0x76d   :  { %v540_v16 = vadd.f32 %v538_v14, %v530_v12  ;;  %v563_v18 = vpop.permute.xlu1 %562  ;;  %v161_v12 = vadd.f32 %v1854_v34, %v1895_v62 }
 0x76e   :  { %v565_v19 = vadd.f32 %v563_v18, %v555_v15 }
 0x76f   :  { %1638 = vtanh.f32 %v540_v16 }
 0x770   :  { %1640 = vtanh.f32 %v565_v19 }
 0x779   :  { %v1639_v20 = vpop.eup %1638 }
 0x77a   :  { %v1641_v22 = vpop.eup %1640  ;;  %543 = vrot.lane.b32.xlu0 %v1639_v20, %s1758_s8 }
 0x77b   :  { %568 = vrot.lane.b32.xlu1 %v1641_v22, %s1758_s8 }
 0x7ec   :  { %v544_v23 = vpop.permute.xlu0 %543 }
 0x7ed   :  { %v546_v24 = vmul.f32 %v1635_v3, %v544_v23  ;;  %v569_v25 = vpop.permute.xlu1 %568 }
 0x7ee   :  { %v571_v26 = vmul.f32 %v1637_v7, %v569_v25 }
 0x7ef   :  { %573 = vrot.lane.b32.xlu0 %v546_v24, %s1759_s9 }
 0x7f0   :  { %577 = vrot.lane.b32.xlu1 %v571_v26, %s1758_s8 }
 0x861   :  { %v574_v28 = vpop.permute.xlu0 %573 }
 0x862   :  { %v578_v30 = vpop.permute.xlu1 %577 }
 0x863   :  { %v580_v31 = vsel %vm49_vm0, %v574_v28, %v578_v30 }
 0x864   :  { %1393 = vmatmul.mubr.msk.f32.vlgmr.msra.gmra.mrb[10].mxu0 %vm204_vm1, %v580_v31 }
 0x865   :  { %1534 = vmatpush1.bf16.msra.mxu0 %v1801_v8  ;;  %916 = vmatprep.mubr.f32.mxu0 %v1757_v0 }
 0x866   :  { %1536 = vmatprep.subr.bf16.mxu0 %v1804_v13 }
 0x869   :  { %1538 = vmatpush1.bf16.msra.mxu0 %v1807_v17 }
 0x86a   :  { %1540 = vmatprep.subr.bf16.mxu0 %v1810_v21 }
 0x86d   :  { %1542 = vmatpush1.bf16.msra.mxu0 %v1817_v27 }
 0x86e   :  { %1544 = vmatprep.subr.bf16.mxu0 %v1823_v29 }
 0x871   :  { %1546 = vmatpush1.bf16.msra.mxu0 %v1828_v32 }
 0x872   :  { %1564 = vmatprep.subr.bf16.mxu0 %v1799_v4 }
 0x937   :  { %v650_v35 = vpop.f32.mrb[10].mxu0 }
 0x938   :  { %v656_v36 = vadd.f32 %v650_v35, %v156_v33  ;;  %v652_v37 = vpop.f32.mrb[11].mxu0 }
 0x939   :  { %v681_v38 = vadd.f32 %v1916_v6, %v652_v37 }
 0x93a   :  { %1642 = vtanh.f32 %v656_v36  ;;  %v1394_v41 = vmul.f32 -1.442695, %v656_v36 }
 0x93b   :  { %1644 = vtanh.f32 %v681_v38  ;;  %v1395_v42 = vmul.f32 -1.442695, %v681_v38 }
 0x93c   :  { %1646 = vpow2.f32 %v1394_v41 }
 0x93d   :  { %1648 = vpow2.f32 %v1395_v42 }
 0x944   :  { %v1643_v39 = vpop.eup %1642 }
 0x945   :  { %v1645_v40 = vpop.eup %1644  ;;  %666 = vrot.lane.b32.xlu0 %v1643_v39, %s1758_s8 }
 0x946   :  { %691 = vrot.lane.b32.xlu1 %v1645_v40, %s1758_s8  ;;  %v1647_v43 = vpop.eup %1646 }
 0x947   :  { %v1649_v44 = vpop.eup %1648  ;;  %v660_v59 = vadd.f32 1.0, %v1647_v43 }
 0x948   :  { %v685_v45 = vadd.f32 1.0, %v1649_v44 }
 0x949   :  { %1650 = vrcp.f32 %v660_v59 }
 0x94a   :  { %1652 = vrcp.f32 %v685_v45 }
 0x953   :  { %v1651_v46 = vpop.eup %1650 }
 0x954   :  { %v1653_v48 = vpop.eup %1652  ;;  %v664_v52 = vmul.f32 %v1651_v46, %v540_v16 }
 0x955   :  { %v689_v54 = vmul.f32 %v1653_v48, %v565_v19 }
 0x9b7   :  { %v667_v47 = vpop.permute.xlu0 %666 }
 0x9b8   :  { %v669_v49 = vmul.f32 %v1651_v46, %v667_v47  ;;  %v692_v50 = vpop.permute.xlu1 %691 }
 0x9b9   :  { %v694_v51 = vmul.f32 %v1653_v48, %v692_v50  ;;  %v166_v50 = vadd.f32 %v1893_v61, %v1854_v34 }
 0x9ba   :  { %671 = vrot.lane.b32.xlu0 %v669_v49, %s1759_s9 }
 0x9bb   :  { %696 = vrot.lane.b32.xlu1 %v694_v51, %s1759_s9 }
 0xa2c   :  { %v672_v53 = vpop.permute.xlu0 %671 }
 0xa2d   :  { %v674_v55 = vadd.f32 %v672_v53, %v664_v52  ;;  %v697_v56 = vpop.permute.xlu1 %696 }
 0xa2e   :  { %v699_v57 = vadd.f32 %v697_v56, %v689_v54 }
 0xa2f   :  { %1654 = vtanh.f32 %v674_v55 }
 0xa30   :  { %1656 = vtanh.f32 %v699_v57 }
 0xa39   :  { %v1655_v58 = vpop.eup %1654 }
 0xa3a   :  { %v1657_v60 = vpop.eup %1656  ;;  %677 = vrot.lane.b32.xlu0 %v1655_v58, %s1758_s8 }
 0xa3b   :  { %702 = vrot.lane.b32.xlu1 %v1657_v60, %s1758_s8 }
 0xaac   :  { %v678_v2 = vpop.permute.xlu0 %677 }
 0xaad   :  { %v680_v3 = vmul.f32 %v1651_v46, %v678_v2  ;;  %v703_v5 = vpop.permute.xlu1 %702 }
 0xaae   :  { %v705_v7 = vmul.f32 %v1653_v48, %v703_v5 }
 0xaaf   :  { %707 = vrot.lane.b32.xlu0 %v680_v3, %s1759_s9 }
 0xab0   :  { %711 = vrot.lane.b32.xlu1 %v705_v7, %s1758_s8 }
 0xb21   :  { %v708_v9 = vpop.permute.xlu0 %707 }
 0xb22   :  { %v712_v10 = vpop.permute.xlu1 %711 }
 0xb23   :  { %v714_v11 = vsel %vm49_vm0, %v708_v9, %v712_v10 }
 0xb24   :  { %1396 = vmatmul.mubr.msk.f32.vlgmr.msra.gmra.mrb[4].mxu1 %vm204_vm1, %v714_v11 }
 0xb25   :  { %1550 = vmatpush1.bf16.msra.mxu1 %v1801_v8  ;;  %1050 = vmatprep.mubr.f32.mxu1 %v1757_v0 }
 0xb26   :  { %1552 = vmatprep.subr.bf16.mxu1 %v1804_v13 }
 0xb29   :  { %1554 = vmatpush1.bf16.msra.mxu1 %v1807_v17 }
 0xb2a   :  { %1556 = vmatprep.subr.bf16.mxu1 %v1810_v21 }
 0xb2d   :  { %1558 = vmatpush1.bf16.msra.mxu1 %v1817_v27 }
 0xb2e   :  { %1560 = vmatprep.subr.bf16.mxu1 %v1823_v29 }
 0xb31   :  { %1562 = vmatpush1.bf16.msra.mxu1 %v1828_v32 }
 0xb32   :  { %1580 = vmatprep.subr.bf16.mxu1 %v1799_v4 }
 0xbf7   :  { %v784_v14 = vpop.f32.mrb[4].mxu1 }
 0xbf8   :  { %v790_v15 = vadd.f32 %v784_v14, %v161_v12  ;;  %v786_v16 = vpop.f32.mrb[5].mxu1 }
 0xbf9   :  { %v815_v18 = vadd.f32 %v1916_v6, %v786_v16 }
 0xbfa   :  { %1658 = vtanh.f32 %v790_v15  ;;  %v1397_v22 = vmul.f32 -1.442695, %v790_v15 }
 0xbfb   :  { %1660 = vtanh.f32 %v815_v18  ;;  %v1398_v23 = vmul.f32 -1.442695, %v815_v18 }
 0xbfc   :  { %1662 = vpow2.f32 %v1397_v22 }
 0xbfd   :  { %1664 = vpow2.f32 %v1398_v23 }
 0xc04   :  { %v1659_v19 = vpop.eup %1658 }
 0xc05   :  { %v1661_v20 = vpop.eup %1660  ;;  %800 = vrot.lane.b32.xlu0 %v1659_v19, %s1758_s8 }
 0xc06   :  { %825 = vrot.lane.b32.xlu1 %v1661_v20, %s1758_s8  ;;  %v1663_v4 = vpop.eup %1662 }
 0xc07   :  { %v1665_v24 = vpop.eup %1664  ;;  %v794_v62 = vadd.f32 1.0, %v1663_v4 }
 0xc08   :  { %v819_v25 = vadd.f32 1.0, %v1665_v24 }
 0xc09   :  { %1666 = vrcp.f32 %v794_v62 }
 0xc0a   :  { %1668 = vrcp.f32 %v819_v25 }
 0xc13   :  { %v1667_v26 = vpop.eup %1666 }
 0xc14   :  { %v1669_v30 = vpop.eup %1668  ;;  %v798_v36 = vmul.f32 %v1667_v26, %v674_v55 }
 0xc15   :  { %v823_v38 = vmul.f32 %v1669_v30, %v699_v57 }
 0xc77   :  { %v801_v28 = vpop.permute.xlu0 %800 }
 0xc78   :  { %v803_v31 = vmul.f32 %v1667_v26, %v801_v28  ;;  %v826_v33 = vpop.permute.xlu1 %825 }
 0xc79   :  { %v828_v35 = vmul.f32 %v1669_v30, %v826_v33 }
 0xc7a   :  { %805 = vrot.lane.b32.xlu0 %v803_v31, %s1759_s9  ;;  %v171_v31 = vadd.f32 %v1854_v34, %v1899_v1 }
 0xc7b   :  { %830 = vrot.lane.b32.xlu1 %v828_v35, %s1759_s9 }
 0xcec   :  { %v806_v37 = vpop.permute.xlu0 %805 }
 0xced   :  { %v808_v39 = vadd.f32 %v806_v37, %v798_v36  ;;  %v831_v40 = vpop.permute.xlu1 %830 }
 0xcee   :  { %v833_v41 = vadd.f32 %v831_v40, %v823_v38 }
 0xcef   :  { %1670 = vtanh.f32 %v808_v39 }
 0xcf0   :  { %1672 = vtanh.f32 %v833_v41 }
 0xcf9   :  { %v1671_v42 = vpop.eup %1670 }
 0xcfa   :  { %v1673_v43 = vpop.eup %1672  ;;  %811 = vrot.lane.b32.xlu0 %v1671_v42, %s1758_s8 }
 0xcfb   :  { %836 = vrot.lane.b32.xlu1 %v1673_v43, %s1758_s8 }
 0xd6c   :  { %v812_v44 = vpop.permute.xlu0 %811 }
 0xd6d   :  { %v814_v59 = vmul.f32 %v1667_v26, %v812_v44  ;;  %v837_v45 = vpop.permute.xlu1 %836 }
 0xd6e   :  { %v839_v46 = vmul.f32 %v1669_v30, %v837_v45 }
 0xd6f   :  { %841 = vrot.lane.b32.xlu0 %v814_v59, %s1759_s9 }
 0xd70   :  { %845 = vrot.lane.b32.xlu1 %v839_v46, %s1758_s8 }
 0xde1   :  { %v842_v47 = vpop.permute.xlu0 %841 }
 0xde2   :  { %v846_v48 = vpop.permute.xlu1 %845 }
 0xde3   :  { %v848_v49 = vsel %vm49_vm0, %v842_v47, %v846_v48 }
 0xde4   :  { %1399 = vmatmul.mubr.msk.f32.vlgmr.msra.gmra.mrb[12].mxu0 %vm204_vm1, %v848_v49 }
 0xde5   :  { %1566 = vmatpush1.bf16.msra.mxu0 %v1801_v8  ;;  %1184 = vmatprep.mubr.f32.mxu0 %v1757_v0 }
 0xde6   :  { %1568 = vmatprep.subr.bf16.mxu0 %v1804_v13 }
 0xde9   :  { %1570 = vmatpush1.bf16.msra.mxu0 %v1807_v17 }
 0xdea   :  { %1572 = vmatprep.subr.bf16.mxu0 %v1810_v21 }
 0xded   :  { %1574 = vmatpush1.bf16.msra.mxu0 %v1817_v27 }
 0xdee   :  { %1576 = vmatprep.subr.bf16.mxu0 %v1823_v29 }
 0xdf1   :  { %1578 = vmatpush1.bf16.msra.mxu0 %v1828_v32 }
 0xeb7   :  { %v918_v51 = vpop.f32.mrb[12].mxu0 }
 0xeb8   :  { %v924_v52 = vadd.f32 %v918_v51, %v166_v50  ;;  %v920_v53 = vpop.f32.mrb[13].mxu0 }
 0xeb9   :  { %v949_v54 = vadd.f32 %v1916_v6, %v920_v53 }
 0xeba   :  { %1674 = vtanh.f32 %v924_v52  ;;  %v1400_v57 = vmul.f32 -1.442695, %v924_v52 }
 0xebb   :  { %1676 = vtanh.f32 %v949_v54  ;;  %v1401_v58 = vmul.f32 -1.442695, %v949_v54 }
 0xebc   :  { %1678 = vpow2.f32 %v1400_v57  ;;  %v176_v57 = vadd.f32 %v1897_v63, %v1854_v34 }
 0xebd   :  { %1680 = vpow2.f32 %v1401_v58 }
 0xec4   :  { %v1675_v55 = vpop.eup %1674 }
 0xec5   :  { %v1677_v56 = vpop.eup %1676  ;;  %934 = vrot.lane.b32.xlu0 %v1675_v55, %s1758_s8 }
 0xec6   :  { %959 = vrot.lane.b32.xlu1 %v1677_v56, %s1758_s8  ;;  %v1679_v60 = vpop.eup %1678 }
 0xec7   :  { %v1681_v2 = vpop.eup %1680  ;;  %v928_v61 = vadd.f32 1.0, %v1679_v60 }
 0xec8   :  { %v953_v3 = vadd.f32 1.0, %v1681_v2 }
 0xec9   :  { %1682 = vrcp.f32 %v928_v61 }
 0xeca   :  { %1684 = vrcp.f32 %v953_v3 }
 0xed3   :  { %v1683_v5 = vpop.eup %1682 }
 0xed4   :  { %v1685_v9 = vpop.eup %1684  ;;  %v932_v14 = vmul.f32 %v1683_v5, %v808_v39 }
 0xed5   :  { %v957_v16 = vmul.f32 %v1685_v9, %v833_v41 }
 0xf37   :  { %v935_v7 = vpop.permute.xlu0 %934 }
 0xf38   :  { %v937_v10 = vmul.f32 %v1683_v5, %v935_v7  ;;  %v960_v11 = vpop.permute.xlu1 %959 }
 0xf39   :  { %v962_v12 = vmul.f32 %v1685_v9, %v960_v11 }
 0xf3a   :  { %939 = vrot.lane.b32.xlu0 %v937_v10, %s1759_s9 }
 0xf3b   :  { %964 = vrot.lane.b32.xlu1 %v962_v12, %s1759_s9 }
 0xfac   :  { %v940_v15 = vpop.permute.xlu0 %939 }
 0xfad   :  { %v942_v18 = vadd.f32 %v940_v15, %v932_v14  ;;  %v965_v19 = vpop.permute.xlu1 %964 }
 0xfae   :  { %v967_v20 = vadd.f32 %v965_v19, %v957_v16 }
 0xfaf   :  { %1686 = vtanh.f32 %v942_v18 }
 0xfb0   :  { %1688 = vtanh.f32 %v967_v20 }
 0xfb9   :  { %v1687_v22 = vpop.eup %1686 }
 0xfba   :  { %v1689_v23 = vpop.eup %1688  ;;  %945 = vrot.lane.b32.xlu0 %v1687_v22, %s1758_s8 }
 0xfbb   :  { %970 = vrot.lane.b32.xlu1 %v1689_v23, %s1758_s8 }
0x102c   :  { %v946_v4 = vpop.permute.xlu0 %945 }
0x102d   :  { %v948_v24 = vmul.f32 %v1683_v5, %v946_v4  ;;  %v971_v62 = vpop.permute.xlu1 %970 }
0x102e   :  { %v973_v25 = vmul.f32 %v1685_v9, %v971_v62 }
0x102f   :  { %975 = vrot.lane.b32.xlu0 %v948_v24, %s1759_s9 }
0x1030   :  { %979 = vrot.lane.b32.xlu1 %v973_v25, %s1758_s8 }
0x10a1   :  { %v976_v26 = vpop.permute.xlu0 %975 }
0x10a2   :  { %v980_v28 = vpop.permute.xlu1 %979 }
0x10a3   :  { %v982_v30 = vsel %vm49_vm0, %v976_v26, %v980_v28 }
0x10a4   :  { %1402 = vmatmul.mubr.msk.f32.vlgmr.msra.gmra.mrb[6].mxu1 %vm204_vm1, %v982_v30 }
0x10a5   :  { %1582 = vmatpush1.bf16.msra.mxu1 %v1801_v8  ;;  %1318 = vmatprep.mubr.f32.mxu1 %v1757_v0 }
0x10a6   :  { %1584 = vmatprep.subr.bf16.mxu1 %v1804_v13 }
0x10a9   :  { %1586 = vmatpush1.bf16.msra.mxu1 %v1807_v17 }
0x10aa   :  { %1588 = vmatprep.subr.bf16.mxu1 %v1810_v21 }
0x10ad   :  { %1590 = vmatpush1.bf16.msra.mxu1 %v1817_v27 }
0x10ae   :  { %1592 = vmatprep.subr.bf16.mxu1 %v1823_v29 }
0x10b1   :  { %1594 = vmatpush1.bf16.msra.mxu1 %v1828_v32 }
0x1177   :  { %v1052_v33 = vpop.f32.mrb[6].mxu1 }
0x1178   :  { %v1058_v35 = vadd.f32 %v1052_v33, %v171_v31  ;;  %v1054_v8 = vpop.f32.mrb[7].mxu1 }
0x1179   :  { %v1083_v0 = vadd.f32 %v1916_v6, %v1054_v8 }
0x117a   :  { %1690 = vtanh.f32 %v1058_v35  ;;  %v1403_v21 = vmul.f32 -1.442695, %v1058_v35 }
0x117b   :  { %1692 = vtanh.f32 %v1083_v0  ;;  %v1404_v27 = vmul.f32 -1.442695, %v1083_v0 }
0x117c   :  { %1694 = vpow2.f32 %v1403_v21 }
0x117d   :  { %1696 = vpow2.f32 %v1404_v27 }
0x1184   :  { %v1691_v13 = vpop.eup %1690 }
0x1185   :  { %v1693_v17 = vpop.eup %1692  ;;  %1068 = vrot.lane.b32.xlu0 %v1691_v13, %s1758_s8 }
0x1186   :  { %1093 = vrot.lane.b32.xlu1 %v1693_v17, %s1758_s8  ;;  %v1695_v29 = vpop.eup %1694 }
0x1187   :  { %v1697_v32 = vpop.eup %1696  ;;  %v1062_v1 = vadd.f32 1.0, %v1695_v29 }
0x1188   :  { %v1087_v36 = vadd.f32 1.0, %v1697_v32 }
0x1189   :  { %1698 = vrcp.f32 %v1062_v1 }
0x118a   :  { %1700 = vrcp.f32 %v1087_v36 }
0x1193   :  { %v1699_v37 = vpop.eup %1698 }
0x1194   :  { %v1701_v39 = vpop.eup %1700  ;;  %v1066_v43 = vmul.f32 %v1699_v37, %v942_v18 }
0x1195   :  { %v1091_v59 = vmul.f32 %v1701_v39, %v967_v20 }
0x11f7   :  { %v1069_v38 = vpop.permute.xlu0 %1068 }
0x11f8   :  { %v1071_v40 = vmul.f32 %v1699_v37, %v1069_v38  ;;  %v1094_v41 = vpop.permute.xlu1 %1093 }
0x11f9   :  { %v1096_v42 = vmul.f32 %v1701_v39, %v1094_v41 }
0x11fa   :  { %1073 = vrot.lane.b32.xlu0 %v1071_v40, %s1759_s9 }
0x11fb   :  { %1098 = vrot.lane.b32.xlu1 %v1096_v42, %s1759_s9 }
0x126c   :  { %v1074_v44 = vpop.permute.xlu0 %1073 }
0x126d   :  { %v1076_v45 = vadd.f32 %v1074_v44, %v1066_v43  ;;  %v1099_v46 = vpop.permute.xlu1 %1098 }
0x126e   :  { %v1101_v47 = vadd.f32 %v1099_v46, %v1091_v59 }
0x126f   :  { %1702 = vtanh.f32 %v1076_v45 }
0x1270   :  { %1704 = vtanh.f32 %v1101_v47 }
0x1279   :  { %v1703_v48 = vpop.eup %1702 }
0x127a   :  { %v1705_v49 = vpop.eup %1704  ;;  %1079 = vrot.lane.b32.xlu0 %v1703_v48, %s1758_s8  ;;  %v1367_v48 = vstv %s2069_s3 }
0x127b   :  { %1104 = vrot.lane.b32.xlu1 %v1705_v49, %s1758_s8 }
0x12ec   :  { %v1080_v50 = vpop.permute.xlu0 %1079 }
0x12ed   :  { %v1082_v51 = vmul.f32 %v1699_v37, %v1080_v50  ;;  %v1105_v52 = vpop.permute.xlu1 %1104 }
0x12ee   :  { %v1107_v53 = vmul.f32 %v1701_v39, %v1105_v52  ;;  %v1410_v39 = vld [vmem:[%s2068_s2 + $0x1] ss:$0 sm:$0xff] }
0x12ef   :  { %1109 = vrot.lane.b32.xlu0 %v1082_v51, %s1759_s9 }
0x12f0   :  { %1113 = vrot.lane.b32.xlu1 %v1107_v53, %s1758_s8 }
0x1361   :  { %v1110_v54 = vpop.permute.xlu0 %1109 }
0x1362   :  { %v1114_v55 = vpop.permute.xlu1 %1113 }
0x1363   :  { %v1116_v56 = vsel %vm49_vm0, %v1110_v54, %v1114_v55 }
0x1364   :  { %1405 = vmatmul.mubr.msk.f32.vlgmr.msra.gmra.mrb[14].mxu0 %vm204_vm1, %v1116_v56 }
0x1437   :  { %v1186_v58 = vpop.f32.mrb[14].mxu0 }
0x1438   :  { %v1192_v60 = vadd.f32 %v1186_v58, %v176_v57  ;;  %v1188_v2 = vpop.f32.mrb[15].mxu0 }
0x1439   :  { %v1217_v61 = vadd.f32 %v1916_v6, %v1188_v2 }
0x143a   :  { %1706 = vtanh.f32 %v1192_v60  ;;  %v1406_v7 = vmul.f32 -1.442695, %v1192_v60 }
0x143b   :  { %1708 = vtanh.f32 %v1217_v61  ;;  %v1407_v9 = vmul.f32 -1.442695, %v1217_v61 }
0x143c   :  { %1710 = vpow2.f32 %v1406_v7 }
0x143d   :  { %1712 = vpow2.f32 %v1407_v9 }
0x1444   :  { %v1707_v3 = vpop.eup %1706 }
0x1445   :  { %v1709_v5 = vpop.eup %1708  ;;  %1202 = vrot.lane.b32.xlu0 %v1707_v3, %s1758_s8 }
0x1446   :  { %1227 = vrot.lane.b32.xlu1 %v1709_v5, %s1758_s8  ;;  %v1711_v10 = vpop.eup %1710 }
0x1447   :  { %v1713_v11 = vpop.eup %1712  ;;  %v1196_v34 = vadd.f32 1.0, %v1711_v10 }
0x1448   :  { %v1221_v63 = vadd.f32 1.0, %v1713_v11 }
0x1449   :  { %1714 = vrcp.f32 %v1196_v34 }
0x144a   :  { %1716 = vrcp.f32 %v1221_v63 }
0x1453   :  { %v1715_v12 = vpop.eup %1714 }
0x1454   :  { %v1717_v15 = vpop.eup %1716  ;;  %v1200_v20 = vmul.f32 %v1715_v12, %v1076_v45 }
0x1455   :  { %v1225_v23 = vmul.f32 %v1717_v15, %v1101_v47 }
0x14b7   :  { %v1203_v14 = vpop.permute.xlu0 %1202 }
0x14b8   :  { %v1205_v16 = vmul.f32 %v1715_v12, %v1203_v14  ;;  %v1228_v18 = vpop.permute.xlu1 %1227 }
0x14b9   :  { %v1230_v19 = vmul.f32 %v1717_v15, %v1228_v18 }
0x14ba   :  { %1207 = vrot.lane.b32.xlu0 %v1205_v16, %s1759_s9 }
0x14bb   :  { %1232 = vrot.lane.b32.xlu1 %v1230_v19, %s1759_s9 }
0x152c   :  { %v1208_v22 = vpop.permute.xlu0 %1207 }
0x152d   :  { %v1210_v4 = vadd.f32 %v1208_v22, %v1200_v20  ;;  %v1233_v24 = vpop.permute.xlu1 %1232 }
0x152e   :  { %v1235_v62 = vadd.f32 %v1233_v24, %v1225_v23 }
0x152f   :  { %1718 = vtanh.f32 %v1210_v4 }
0x1530   :  { %1720 = vtanh.f32 %v1235_v62 }
0x1539   :  { %v1719_v25 = vpop.eup %1718 }
0x153a   :  { %v1721_v26 = vpop.eup %1720  ;;  %1213 = vrot.lane.b32.xlu0 %v1719_v25, %s1758_s8 }
0x153b   :  { %1238 = vrot.lane.b32.xlu1 %v1721_v26, %s1758_s8 }
0x15ac   :  { %v1214_v28 = vpop.permute.xlu0 %1213 }
0x15ad   :  { %v1216_v30 = vmul.f32 %v1715_v12, %v1214_v28  ;;  %v1239_v31 = vpop.permute.xlu1 %1238 }
0x15ae   :  { %v1241_v33 = vmul.f32 %v1717_v15, %v1239_v31 }
0x15af   :  { %1243 = vrot.lane.b32.xlu0 %v1216_v30, %s1759_s9 }
0x15b0   :  { %1247 = vrot.lane.b32.xlu1 %v1241_v33, %s1758_s8 }
0x1621   :  { %v1244_v35 = vpop.permute.xlu0 %1243 }
0x1622   :  { %v1248_v8 = vpop.permute.xlu1 %1247 }
0x1623   :  { %v1250_v0 = vsel %vm49_vm0, %v1244_v35, %v1248_v8 }
0x1624   :  { %1408 = vmatmul.mubr.msk.f32.vlgmr.msra.gmra.mrb[8].mxu1 %vm204_vm1, %v1250_v0 }
0x16f7   :  { %v1320_v13 = vpop.f32.mrb[8].mxu1 }
0x16f8   :  { %v1321_v17 = vpop.f32.mrb[9].mxu1 }
0x16f9   :  { %v1324_v21 = vadd.f32 %v1916_v6, %v1321_v17 }
0x16fb   :  { %1722 = vtanh.f32 %v1324_v21  ;;  %v1409_v29 = vmul.f32 -1.442695, %v1324_v21 }
0x16fd   :  { %1724 = vpow2.f32 %v1409_v29 }
0x1705   :  { %v1723_v27 = vpop.eup %1722 }
0x1706   :  { %1334 = vrot.lane.b32.xlu0 %v1723_v27, %s1758_s8 }
0x1707   :  { %v1725_v32 = vpop.eup %1724 }
0x1708   :  { %v1328_v1 = vadd.f32 1.0, %v1725_v32 }
0x170a   :  { %1726 = vrcp.f32 %v1328_v1 }
0x1714   :  { %v1727_v36 = vpop.eup %1726 }
0x1715   :  { %v1332_v6 = vmul.f32 %v1727_v36, %v1235_v62 }
0x1778   :  { %v1335_v37 = vpop.permute.xlu0 %1334 }
0x1779   :  { %v1337_v38 = vmul.f32 %v1727_v36, %v1335_v37 }
0x177b   :  { %1339 = vrot.lane.b32.xlu1 %v1337_v38, %s1759_s9 }
0x177f   :  { %1355 = vrot.lane.b32.xlu1 %v1410_v39, %s1760_s25 }
0x17ed   :  { %v1340_v40 = vpop.permute.xlu1 %1339 }
0x17ee   :  { %v1342_v41 = vadd.f32 %v1340_v40, %v1332_v6 }
0x17f0   :  { %1728 = vtanh.f32 %v1342_v41 }
0x17f1   :  { %v1356_v44 = vpop.permute.xlu1 %1355 }
0x17fa   :  { %v1729_v42 = vpop.eup %1728 }
0x17fb   :  { %1345 = vrot.lane.b32.xlu0 %v1729_v42, %s1758_s8 }
0x186d   :  { %v1346_v43 = vpop.permute.xlu0 %1345 }
0x186e   :  { %v1348_v59 = vmul.f32 %v1727_v36, %v1346_v43 }
0x1870   :  { %v1358_v45 = vmul.f32 %v1356_v44, %v1348_v59 }
0x1872   :  { %1360 = vrot.lane.b32.xlu0 %v1358_v45, %s1759_s9 }
0x18e4   :  { %v1361_v46 = vpop.permute.xlu0 %1360 }
0x18e5   :  { %v1363_v47 = vsel %vm49_vm0, %v1361_v46, 0.0 }
0x18e6   :  { %1364 = vadd.xlane.f32.xlu1 %v1363_v47 }
0x1973   :  { %v1365_v49 = vpop.xlane.xlu1 %1364 }
0x1974   :  { %v1368_v50 = vadd.f32 %v1367_v48, %v1365_v49 }
0x1976   :  { %1370 = vst.msk [vmem:[%s2070_s4] sm:$0xff] %vm1369_vm2, %v1368_v50 }
0x1977   :  { %1375 = vsyncpa [#allocation5], 1 }

</bundles_post_ra>
